<compile_context>
chip_gen: v6e
topology: v6e:2x2x1
jax: 0.10.0
libtpu: 0.0.40
codegen_flags: <defaults>
</compile_context>

<pallas_src>
import jax
import jax.numpy as jnp
import numpy as np
from jax.experimental import pallas as pl
from jax.experimental.pallas import tpu as pltpu


def _round_up(x, m):
    return ((x + m - 1) // m) * m


def audo_attn_kernel(x_ref, y_ref, w1_ref, b1_ref, w2_ref, b2_ref, out_ref):
    """One batch tile, batch-on-lanes layout.

    x_ref, y_ref, out_ref : (N, TB)   channels on sublanes, batch on lanes
    w1_ref : (2N, 2N) conv1 weight (out, in) ; b1_ref : (2N, 1)
    w2_ref : (N, 2N)  conv2 weight (out, in) ; b2_ref : (N, 1)
    """
    x = x_ref[...]
    y = y_ref[...]
    n = x.shape[0]

    def self_att(v):
        # att[b,i,j] = v[i,b] * v[j,b]; softmax over j; energy = att @ v.
        # s is (N, N, TB): j sits on the sublane axis of each slab, batch on
        # lanes -> every vector op below is lane-dense.
        s = v[:, None, :] * v[None, :, :]                 # (N, N, TB)
        m = jnp.max(s, axis=1, keepdims=True)             # (N, 1, TB)
        p = jnp.exp(s - m)                                # unnormalized probs
        den = jnp.sum(p, axis=1)                          # (N, TB)
        num = jnp.sum(p * v[None, :, :], axis=1)          # (N, TB)
        energy = num * pl.reciprocal(den, approx=True)    # softmax @ v
        return v + energy

    xs = self_att(x)
    ys = self_att(y)

    # Channel concat along sublanes (each half is a multiple of 8 rows -> cheap).
    xy = jnp.concatenate([xs, ys], axis=0)                # (2N, TB)

    # Cross attention, algebraically collapsed to O(2N * TB):
    #   energy[c, b] = xy[c, b] * mean_c(xy[:, b]) * sum_c(xy[:, b]^2)
    col_sum = jnp.sum(xy, axis=0, keepdims=True)          # (1, TB)
    col_sumsq = jnp.sum(xy * xy, axis=0, keepdims=True)   # (1, TB)
    scale = col_sum * (1.0 / (2 * n)) * col_sumsq         # (1, TB)
    energy = xy * scale                                   # (2N, TB)

    # conv1 (1x1 Conv1d == linear over channels) + sigmoid; MXU N-dim = TB.
    e = jax.nn.sigmoid(
        jnp.dot(w1_ref[...], energy, preferred_element_type=jnp.float32)
        + b1_ref[...])
    gated = e * xy                                        # (2N, TB)

    # conv2: project 2N -> N channels.
    out = (jnp.dot(w2_ref[...], gated, preferred_element_type=jnp.float32)
           + b2_ref[...])
    out_ref[...] = out.astype(out_ref.dtype)


def prepare_params(w1, b1, w2, b2):
    """One-time (init-time) weight prep, hoisted out of the hot path.

    Because the kernel computes W @ act (channels on rows, batch on lanes), the
    Conv1d weights are used in their native (out, in) orientation; biases become
    column vectors that broadcast over the lane (batch) axis.
      w1: (2N, 2N), b1: (2N,), w2: (N, 2N), b2: (N,)
    """
    two_n = w1.shape[0]
    n = w2.shape[0]
    return {
        "w1": w1.astype(jnp.float32),
        "b1": b1.reshape(two_n, 1).astype(jnp.float32),
        "w2": w2.astype(jnp.float32),
        "b2": b2.reshape(n, 1).astype(jnp.float32),
    }


def _const_spec(arr):
    """Full-array block, constant index map -> stays resident across grid steps."""
    zeros = (0,) * arr.ndim
    return pl.BlockSpec(arr.shape, lambda *_: zeros)


def audo_attn(x, y, params, *, tb=None):
    """x, y: (B, N) float32.  Returns (B, N) float32."""
    B, N = x.shape
    if tb is None:
        # Batch tile on the LANE axis: multiple of 128, capped so ~6 live
        # (N, N, TB) f32 slabs stay well under the 16 MiB default scoped VMEM
        # (tightest on v5e; also safe for v7x's smaller VMEM).  Lane-dense
        # layout => slab bytes really are N*N*TB*4 (no 16->128 padding).
        budget = 8 * 1024 * 1024
        cap = budget // max(1, 6 * N * N * 4)
        cap = max(128, (cap // 128) * 128)
        tb = min(512, cap, _round_up(B, 128))
    tb = max(128, _round_up(tb, 128))
    b_pad = _round_up(B, tb)

    # Batch-on-lanes layout: one cheap XLA transpose outside the kernel.
    xt = jnp.transpose(x).astype(jnp.float32)             # (N, B)
    yt = jnp.transpose(y).astype(jnp.float32)
    if b_pad != B:
        xt = jnp.pad(xt, ((0, 0), (0, b_pad - B)))
        yt = jnp.pad(yt, ((0, 0), (0, b_pad - B)))
    grid = (b_pad // tb,)

    io_spec = pl.BlockSpec((N, tb), lambda i: (0, i))
    weight_args = (params["w1"], params["b1"], params["w2"], params["b2"])
    weight_specs = [_const_spec(a) for a in weight_args]

    out_t = pl.pallas_call(
        audo_attn_kernel,
        out_shape=jax.ShapeDtypeStruct((N, b_pad), jnp.float32),
        grid_spec=pltpu.PrefetchScalarGridSpec(
            num_scalar_prefetch=0,
            grid=grid,
            in_specs=[io_spec, io_spec] + weight_specs,
            out_specs=pl.BlockSpec((N, tb), lambda i: (0, i)),
        ),
        compiler_params=pltpu.CompilerParams(
            dimension_semantics=("parallel",)),
    )(xt, yt, *weight_args)
    return jnp.transpose(out_t[:, :B])


def audo_attn_ref(x, y, w1, b1, w2, b2):
    """Pure-JAX reference mirroring the PyTorch forward (inner dim of 1 implicit)."""
    def self_att(v):
        att = v[:, :, None] * v[:, None, :]
        att = jax.nn.softmax(att, axis=-1)
        energy = jnp.einsum("bij,bj->bi", att, v)
        return v + energy

    xs = self_att(x)
    ys = self_att(y)
    xy = jnp.concatenate([xs, ys], axis=-1)
    att = xy[:, :, None] * xy[:, None, :]
    att_pool = jnp.mean(att, axis=1)
    energy = jnp.einsum("bij,bj->bi", att, att_pool)
    e = jax.nn.sigmoid(energy @ w1.T + b1)
    gated = e * xy
    return gated @ w2.T + b2


if __name__ == "__main__":
    B, N = 2, 16  # batch, in_dim (x has shape (B, in_dim))

    key = jax.random.PRNGKey(0)
    kx, ky, kw1, kb1, kw2, kb2 = jax.random.split(key, 6)

    x = jax.random.normal(kx, (B, N), dtype=jnp.float32)
    y = jax.random.normal(ky, (B, N), dtype=jnp.float32)

    # Conv1d(2N -> 2N, k=1): weight (2N, 2N, 1) -> (2N, 2N), bias (2N,)
    bound = 1.0 / np.sqrt(2 * N)
    w1 = jax.random.uniform(kw1, (2 * N, 2 * N), jnp.float32, -bound, bound)
    b1 = jax.random.uniform(kb1, (2 * N,), jnp.float32, -bound, bound)
    # Conv1d(2N -> N, k=1): weight (N, 2N, 1) -> (N, 2N), bias (N,)
    w2 = jax.random.uniform(kw2, (N, 2 * N), jnp.float32, -bound, bound)
    b2 = jax.random.uniform(kb2, (N,), jnp.float32, -bound, bound)

    params = prepare_params(w1, b1, w2, b2)  # hoisted once, not per call

    # Main check (B=2 -> padded to one 128-lane tile, grid=(1,)).
    out = jax.block_until_ready(audo_attn(x, y, params))
    ref = audo_attn_ref(x, y, w1, b1, w2, b2)
    # approx=True reciprocal in the softmax -> compare at 1e-2.
    np.testing.assert_allclose(np.asarray(out), np.asarray(ref), rtol=1e-2, atol=1e-2)
    assert out.shape == (B, N)

    # Second check exercising a multi-step batch grid (padding + resident weights).
    B2 = 300
    kx2, ky2 = jax.random.split(jax.random.PRNGKey(1), 2)
    x2 = jax.random.normal(kx2, (B2, N), dtype=jnp.float32)
    y2 = jax.random.normal(ky2, (B2, N), dtype=jnp.float32)
    out2 = jax.block_until_ready(audo_attn(x2, y2, params, tb=128))  # grid = (3,)
    ref2 = audo_attn_ref(x2, y2, w1, b1, w2, b2)
    np.testing.assert_allclose(np.asarray(out2), np.asarray(ref2), rtol=1e-2, atol=1e-2)
    assert out2.shape == (B2, N)

    print("KERNEL_OK")
</pallas_src>

<mosaic_0001>
module attributes {stable_mosaic.version = 11 : i64} {
  func.func @audo_attn_kernel(%arg0: i32, %arg1: memref<16x128xf32, #tpu.memory_space<vmem>>, %arg2: memref<16x128xf32, #tpu.memory_space<vmem>>, %arg3: memref<32x32xf32, #tpu.memory_space<vmem>>, %arg4: memref<32x1xf32, #tpu.memory_space<vmem>>, %arg5: memref<16x32xf32, #tpu.memory_space<vmem>>, %arg6: memref<16x1xf32, #tpu.memory_space<vmem>>, %arg7: memref<16x128xf32, #tpu.memory_space<vmem>>) attributes {dimension_semantics = [#tpu.dimension_semantics<parallel>], iteration_bounds = array<i64: 1>, scalar_prefetch = 0 : i64, scratch_operands = 0 : i64, tpu.core_type = #tpu.core_type<tc>, window_params = [{transform_indices = @transform_0, window_bounds = array<i64: 16, 128>}, {transform_indices = @transform_1, window_bounds = array<i64: 16, 128>}, {pipeline_mode = #tpu.pipeline_mode<synchronous>, transform_indices = @transform_2, window_bounds = array<i64: 32, 32>}, {pipeline_mode = #tpu.pipeline_mode<synchronous>, transform_indices = @transform_3, window_bounds = array<i64: 32, 1>}, {pipeline_mode = #tpu.pipeline_mode<synchronous>, transform_indices = @transform_4, window_bounds = array<i64: 16, 32>}, {pipeline_mode = #tpu.pipeline_mode<synchronous>, transform_indices = @transform_5, window_bounds = array<i64: 16, 1>}, {transform_indices = @transform_6, window_bounds = array<i64: 16, 128>}]} {
    %c0 = arith.constant 0 : index
    %c0_0 = arith.constant 0 : index
    %0 = vector.load %arg1[%c0, %c0_0] : memref<16x128xf32, #tpu.memory_space<vmem>>, vector<16x128xf32>
    %c0_1 = arith.constant 0 : index
    %c0_2 = arith.constant 0 : index
    %1 = vector.load %arg2[%c0_1, %c0_2] : memref<16x128xf32, #tpu.memory_space<vmem>>, vector<16x128xf32>
    %2 = vector.shape_cast %0 : vector<16x128xf32> to vector<16x1x128xf32>
    %3 = vector.shape_cast %0 : vector<16x128xf32> to vector<1x16x128xf32>
    %4 = vector.broadcast %2 : vector<16x1x128xf32> to vector<16x16x128xf32>
    %5 = vector.broadcast %3 : vector<1x16x128xf32> to vector<16x16x128xf32>
    %6 = arith.mulf %4, %5 : vector<16x16x128xf32>
    %cst = arith.constant dense<0xFF800000> : vector<16x128xf32>
    %7 = vector.multi_reduction <maximumf>, %6, %cst [1] : vector<16x16x128xf32> to vector<16x128xf32>
    %8 = vector.shape_cast %7 : vector<16x128xf32> to vector<16x1x128xf32>
    %9 = vector.broadcast %8 : vector<16x1x128xf32> to vector<16x16x128xf32>
    %10 = arith.subf %6, %9 : vector<16x16x128xf32>
    %11 = math.exp %10 : vector<16x16x128xf32>
    %cst_3 = arith.constant dense<0.000000e+00> : vector<16x128xf32>
    %12 = vector.multi_reduction <add>, %11, %cst_3 [1] : vector<16x16x128xf32> to vector<16x128xf32>
    %13 = vector.shape_cast %0 : vector<16x128xf32> to vector<1x16x128xf32>
    %14 = vector.broadcast %13 : vector<1x16x128xf32> to vector<16x16x128xf32>
    %15 = arith.mulf %11, %14 : vector<16x16x128xf32>
    %cst_4 = arith.constant dense<0.000000e+00> : vector<16x128xf32>
    %16 = vector.multi_reduction <add>, %15, %cst_4 [1] : vector<16x16x128xf32> to vector<16x128xf32>
    %17 = tpu.reciprocal %12 {approx = true} : vector<16x128xf32> -> vector<16x128xf32>
    %18 = arith.mulf %16, %17 : vector<16x128xf32>
    %19 = arith.addf %0, %18 : vector<16x128xf32>
    %20 = vector.shape_cast %1 : vector<16x128xf32> to vector<16x1x128xf32>
    %21 = vector.shape_cast %1 : vector<16x128xf32> to vector<1x16x128xf32>
    %22 = vector.broadcast %20 : vector<16x1x128xf32> to vector<16x16x128xf32>
    %23 = vector.broadcast %21 : vector<1x16x128xf32> to vector<16x16x128xf32>
    %24 = arith.mulf %22, %23 : vector<16x16x128xf32>
    %cst_5 = arith.constant dense<0xFF800000> : vector<16x128xf32>
    %25 = vector.multi_reduction <maximumf>, %24, %cst_5 [1] : vector<16x16x128xf32> to vector<16x128xf32>
    %26 = vector.shape_cast %25 : vector<16x128xf32> to vector<16x1x128xf32>
    %27 = vector.broadcast %26 : vector<16x1x128xf32> to vector<16x16x128xf32>
    %28 = arith.subf %24, %27 : vector<16x16x128xf32>
    %29 = math.exp %28 : vector<16x16x128xf32>
    %cst_6 = arith.constant dense<0.000000e+00> : vector<16x128xf32>
    %30 = vector.multi_reduction <add>, %29, %cst_6 [1] : vector<16x16x128xf32> to vector<16x128xf32>
    %31 = vector.shape_cast %1 : vector<16x128xf32> to vector<1x16x128xf32>
    %32 = vector.broadcast %31 : vector<1x16x128xf32> to vector<16x16x128xf32>
    %33 = arith.mulf %29, %32 : vector<16x16x128xf32>
    %cst_7 = arith.constant dense<0.000000e+00> : vector<16x128xf32>
    %34 = vector.multi_reduction <add>, %33, %cst_7 [1] : vector<16x16x128xf32> to vector<16x128xf32>
    %35 = tpu.reciprocal %30 {approx = true} : vector<16x128xf32> -> vector<16x128xf32>
    %36 = arith.mulf %34, %35 : vector<16x128xf32>
    %37 = arith.addf %1, %36 : vector<16x128xf32>
    %38 = tpu.concatenate %19, %37 in 0 : vector<16x128xf32>, vector<16x128xf32> -> vector<32x128xf32>
    %cst_8 = arith.constant dense<0.000000e+00> : vector<128xf32>
    %39 = vector.multi_reduction <add>, %38, %cst_8 [0] : vector<32x128xf32> to vector<128xf32>
    %40 = vector.shape_cast %39 : vector<128xf32> to vector<1x128xf32>
    %41 = arith.mulf %38, %38 : vector<32x128xf32>
    %cst_9 = arith.constant dense<0.000000e+00> : vector<128xf32>
    %42 = vector.multi_reduction <add>, %41, %cst_9 [0] : vector<32x128xf32> to vector<128xf32>
    %43 = vector.shape_cast %42 : vector<128xf32> to vector<1x128xf32>
    %cst_10 = arith.constant 3.125000e-02 : f32
    %44 = vector.broadcast %cst_10 : f32 to vector<1x128xf32>
    %45 = arith.mulf %40, %44 : vector<1x128xf32>
    %46 = arith.mulf %45, %43 : vector<1x128xf32>
    %47 = vector.broadcast %46 : vector<1x128xf32> to vector<32x128xf32>
    %48 = arith.mulf %38, %47 : vector<32x128xf32>
    %c0_11 = arith.constant 0 : index
    %c0_12 = arith.constant 0 : index
    %49 = vector.load %arg3[%c0_11, %c0_12] : memref<32x32xf32, #tpu.memory_space<vmem>>, vector<32x32xf32>
    %cst_13 = arith.constant dense<0.000000e+00> : vector<32x128xf32>
    %50 = tpu.matmul %49, %48, %cst_13 {dimension_numbers = #tpu.dot_dimension_numbers<[1], [0], [0], [1], [0, 0, 1, 1], [], []>} : vector<32x32xf32>, vector<32x128xf32>, vector<32x128xf32> -> vector<32x128xf32>
    %c0_14 = arith.constant 0 : index
    %c0_15 = arith.constant 0 : index
    %51 = vector.load %arg4[%c0_14, %c0_15] : memref<32x1xf32, #tpu.memory_space<vmem>>, vector<32x1xf32>
    %52 = vector.broadcast %51 : vector<32x1xf32> to vector<32x128xf32>
    %53 = arith.addf %50, %52 : vector<32x128xf32>
    %54 = arith.negf %53 : vector<32x128xf32>
    %55 = math.exp %54 : vector<32x128xf32>
    %cst_16 = arith.constant 1.000000e+00 : f32
    %56 = vector.broadcast %cst_16 : f32 to vector<32x128xf32>
    %57 = arith.addf %56, %55 : vector<32x128xf32>
    %58 = arith.divf %56, %57 : vector<32x128xf32>
    %59 = arith.mulf %58, %38 : vector<32x128xf32>
    %c0_17 = arith.constant 0 : index
    %c0_18 = arith.constant 0 : index
    %60 = vector.load %arg5[%c0_17, %c0_18] : memref<16x32xf32, #tpu.memory_space<vmem>>, vector<16x32xf32>
    %cst_19 = arith.constant dense<0.000000e+00> : vector<16x128xf32>
    %61 = tpu.matmul %60, %59, %cst_19 {dimension_numbers = #tpu.dot_dimension_numbers<[1], [0], [0], [1], [0, 0, 1, 1], [], []>} : vector<16x32xf32>, vector<32x128xf32>, vector<16x128xf32> -> vector<16x128xf32>
    %c0_20 = arith.constant 0 : index
    %c0_21 = arith.constant 0 : index
    %62 = vector.load %arg6[%c0_20, %c0_21] : memref<16x1xf32, #tpu.memory_space<vmem>>, vector<16x1xf32>
    %63 = vector.broadcast %62 : vector<16x1xf32> to vector<16x128xf32>
    %64 = arith.addf %61, %63 : vector<16x128xf32>
    %c0_22 = arith.constant 0 : index
    %c0_23 = arith.constant 0 : index
    %65 = vector.load %arg7[%c0_22, %c0_23] : memref<16x128xf32, #tpu.memory_space<vmem>>, vector<16x128xf32>
    tpu.vector_store %arg7[%c0_22, %c0_23], %64 {strides = array<i32>} : memref<16x128xf32, #tpu.memory_space<vmem>>, vector<16x128xf32>,
    return
  }
  func.func @transform_0(%arg0: i32) -> (i32, i32) {
    %c0_i32 = arith.constant 0 : i32
    %c0_i32_0 = arith.constant 0 : i32
    return %c0_i32, %arg0 : i32, i32
  }
  func.func @transform_1(%arg0: i32) -> (i32, i32) {
    %c0_i32 = arith.constant 0 : i32
    %c0_i32_0 = arith.constant 0 : i32
    return %c0_i32, %arg0 : i32, i32
  }
  func.func @transform_2(%arg0: i32) -> (i32, i32) {
    %c0_i32 = arith.constant 0 : i32
    %c0_i32_0 = arith.constant 0 : i32
    %c0_i32_1 = arith.constant 0 : i32
    return %c0_i32, %c0_i32_0 : i32, i32
  }
  func.func @transform_3(%arg0: i32) -> (i32, i32) {
    %c0_i32 = arith.constant 0 : i32
    %c0_i32_0 = arith.constant 0 : i32
    %c0_i32_1 = arith.constant 0 : i32
    return %c0_i32, %c0_i32_0 : i32, i32
  }
  func.func @transform_4(%arg0: i32) -> (i32, i32) {
    %c0_i32 = arith.constant 0 : i32
    %c0_i32_0 = arith.constant 0 : i32
    %c0_i32_1 = arith.constant 0 : i32
    return %c0_i32, %c0_i32_0 : i32, i32
  }
  func.func @transform_5(%arg0: i32) -> (i32, i32) {
    %c0_i32 = arith.constant 0 : i32
    %c0_i32_0 = arith.constant 0 : i32
    %c0_i32_1 = arith.constant 0 : i32
    return %c0_i32, %c0_i32_0 : i32, i32
  }
  func.func @transform_6(%arg0: i32) -> (i32, i32) {
    %c0_i32 = arith.constant 0 : i32
    %c0_i32_0 = arith.constant 0 : i32
    return %c0_i32, %arg0 : i32, i32
  }
}

</mosaic_0001>

<bundles_post_ra>
// kernel: tpu_custom_call.1
= control target key start
LH: loop header
LB: loop body
LE: loop exit
PB: predicated region body
PF: predicated region fallthrough
CT: control target
= control target key end

     0   :  { %11 = vsyncpa [#allocation3], 0  ;;  %s3431_s0 = inlined_call_operand.vmem [shape: f32[16,128], index: 0, kind: input, shape index: {}]   ;;  %s3432_s1 = inlined_call_operand.hbm [shape: f32[16,128], index: 1, kind: input, shape index: {}]   ;;  %s3433_s2 = inlined_call_operand.vmem [shape: f32[32,32], index: 2, kind: input, shape index: {}]   ;;  %s3434_s3 = inlined_call_operand.vmem [shape: f32[32,1], index: 3, kind: input, shape index: {}]   ;;  %s3435_s4 = inlined_call_operand.hbm [shape: f32[16,32], index: 4, kind: input, shape index: {}]   ;;  %s3436_s5 = inlined_call_operand.vmem [shape: f32[16,1], index: 5, kind: input, shape index: {}]   ;;  %s3437_s6 = inlined_call_operand.hbm [shape: f32[16,128], index: 6, kind: output, shape index: {}]  }
   0x1   :  { %12 = vsyncpa [#allocation6], 0 }
   0x2   :  { %13 = vsyncpa [#allocation4], 0  ;;  %s2184_s21 = smov [#allocation2]  }
   0x3   :  { %s21_s22 = sshll.u32 %s2184_s21, 4  ;;  %s22_s22 = int_to_ptr.vmem [resolvable:$true] %s21_s22 }
   0x4   :  { %s2126_s23 = scalar_lea.vmem %s22_s22, 256  ;;  %p2131_p1 = scmp.lt.s32.totalorder %s22_s22, %s22_s22 }
   0x5   :  { %p2127_p0 = scmp.ne.s32.totalorder %s22_s22, %s2126_s23  ;;  %p2132_p2 = scmp.lt.s32.totalorder %s2126_s23, %s2126_s23 }
   0x7   :  { %p2133_p3 = por %p2132_p2, %p2131_p1 }
   0x9   :  { %p2134_p4 = pnand %p2133_p3, %p2127_p0 }
   0xb   :  { %2137 = shalt.err (!%p2134_p4)
}
   0xc   :  { %s2185_s24 = smov 128   ;;  %s2186_s25 = smov 8  }
   0xd   :  { %27 = dma.hbm_to_vmem [thread:$0]  %s3432_s1, 256, %s22_s22, [#allocation3], %s2185_s24, %s2185_s24, %s2186_s25  }
   0xe   :  { %s2187_s28 = smov [#allocation5]  }
   0xf   :  { %s37_s29 = sshll.u32 %s2187_s28, 4  ;;  %s38_s29 = int_to_ptr.vmem [resolvable:$true] %s37_s29 }
  0x10   :  { %s2146_s30 = scalar_lea.vmem %s38_s29, 256  ;;  %p2151_p6 = scmp.lt.s32.totalorder %s38_s29, %s38_s29 }
  0x11   :  { %p2147_p5 = scmp.ne.s32.totalorder %s38_s29, %s2146_s30  ;;  %p2152_p7 = scmp.lt.s32.totalorder %s2146_s30, %s2146_s30 }
  0x13   :  { %p2153_p8 = por %p2152_p7, %p2151_p6 }
  0x15   :  { %p2154_p9 = pnand %p2153_p8, %p2147_p5 }
  0x17   :  { %2157 = shalt.err (!%p2154_p9)
}
  0x18   :  { %43 = dma.hbm_to_vmem [thread:$0]  %s3435_s4, 256, %s38_s29, [#allocation6], %s2185_s24, %s2185_s24, %s2186_s25  }
  0x19   :  { %2178 = dma.done.wait [#allocation3], 256  }
  0x1a   :  { %2179 = vsyncadd [#allocation3], 4294967040 }
  0x1b   :  { %2180 = dma.done.wait [#allocation6], 256  }
  0x1c   :  { %2181 = vsyncadd [#allocation6], 4294967040  ;;  %v62_v0 = vlaneseq  ;;  %v2188_v1 = vmov 1966171168   ;;  %v2243_v6 = vld [vmem:[%s3431_s0] sm:$0xff]  ;;  %v2253_v11 = vld [vmem:[%s3431_s0 + $0x8] sm:$0xff] }
  0x1d   :  { %v60_v2 = vunpack.c.l.s4 %v2188_v1  ;;  %3507 = vst [vmem:[#allocation12_spill] sm:$0xff] %v2243_v6  ;;  %v58_v7 = vcombine.high %v2243_v6, %v2243_v6  ;;  %3508 = vst [vmem:[#allocation13_spill] sm:$0xff] %v2253_v11  ;;  %v107_v15 = vcombine.high %v2253_v11, %v2253_v11  ;;  %vm780_vm0 = vcmask 1041409  }
  0x1e   :  { %v63_v4 = vshrl.u32 %v62_v0, 7  ;;  %vm782_vm1 = vcmask 1042434   ;;  %vm784_vm2 = vcmask 1043459   ;;  %vm786_vm3 = vcmask 1044484  }
  0x1f   :  { %v61_v3 = vunpack.c.0.s8 %v60_v2  ;;  %vm788_vm4 = vcmask 1045509   ;;  %vm790_vm5 = vcmask 1046534   ;;  %vm1603_vm6 = vcmask 261120  }
  0x20   :  { %v2259_v16 = vsub.s32 0, %v63_v4  ;;  %vm792_vm7 = vcmask 1047559  }
  0x21   :  { %v2238_v5 = vsub.s32 %v61_v3, %v63_v4 }
  0x22   :  { %3509 = vst [vmem:[#allocation14_spill] sm:$0xff] %v2259_v16 }
  0x23   :  { %3506 = vst [vmem:[#allocation11_spill] sm:$0xff] %v2238_v5  ;;  %v65_v8 = vrot.slane %v2243_v6, %v2238_v5  ;;  %v72_v9 = vrot.slane %v58_v7, %v2238_v5  ;;  %v114_v18 = vrot.slane %v2253_v11, %v2238_v5  ;;  %v121_v22 = vrot.slane %v107_v15, %v2238_v5 }
  0x25   :  { %v73_v10 = vcombine.high %v65_v8, %v65_v8  ;;  %v74_v12 = vcombine.high %v72_v9, %v72_v9  ;;  %v81_v13 = vrot.slane %v65_v8, %v2238_v5  ;;  %v88_v17 = vrot.slane %v72_v9, %v2238_v5 }
  0x26   :  { %v122_v25 = vcombine.high %v114_v18, %v114_v18  ;;  %v130_v27 = vrot.slane %v114_v18, %v2238_v5  ;;  %v123_v31 = vcombine.high %v121_v22, %v121_v22  ;;  %v137_v35 = vrot.slane %v121_v22, %v2238_v5 }
  0x27   :  { %v95_v14 = vrot.slane %v73_v10, %v2238_v5  ;;  %v102_v19 = vrot.slane %v74_v12, %v2238_v5  ;;  %v103_v20 = vcombine.high %v81_v13, %v81_v13  ;;  %v159_v23 = vrot.slane %v81_v13, %v2259_v16 }
  0x28   :  { %v104_v24 = vcombine.high %v88_v17, %v88_v17  ;;  %v175_v32 = vrot.slane %v88_v17, %v2259_v16  ;;  %v144_v36 = vrot.slane %v122_v25, %v2238_v5  ;;  %v152_v39 = vcombine.high %v130_v27, %v130_v27 }
  0x29   :  { %v105_v21 = vcombine.high %v95_v14, %v95_v14  ;;  %v106_v26 = vcombine.high %v102_v19, %v102_v19  ;;  %v163_v28 = vrot.slane %v95_v14, %v2259_v16  ;;  %v167_v29 = vrot.slane %v103_v20, %v2259_v16 }
  0x2a   :  { %v2273_v33 = vmul.f32 %v159_v23, %v2243_v6  ;;  %v2276_v34 = vmul.f32 %v159_v23, %v2253_v11  ;;  %v179_v37 = vrot.slane %v102_v19, %v2259_v16  ;;  %v183_v38 = vrot.slane %v104_v24, %v2259_v16 }
  0x2b   :  { %v171_v30 = vrot.slane %v105_v21, %v2259_v16  ;;  %v187_v40 = vrot.slane %v106_v26, %v2259_v16  ;;  %v2284_v41 = vmul.f32 %v163_v28, %v2243_v6  ;;  %v2287_v42 = vmul.f32 %v163_v28, %v2253_v11 }
  0x2c   :  { %v2290_v43 = vmul.f32 %v167_v29, %v2243_v6  ;;  %v2293_v44 = vmul.f32 %v167_v29, %v2253_v11  ;;  %v151_v47 = vrot.slane %v123_v31, %v2238_v5  ;;  %v2303_v48 = vmul.f32 %v175_v32, %v2243_v6 }
  0x2d   :  { %v2296_v45 = vmul.f32 %v171_v30, %v2243_v6  ;;  %v2299_v46 = vmul.f32 %v171_v30, %v2253_v11  ;;  %v2306_v49 = vmul.f32 %v175_v32, %v2253_v11  ;;  %v268_v50 = vmax.f32 %v2273_v33, %v2276_v34 }
  0x2e   :  { %v2311_v51 = vmul.f32 %v179_v37, %v2243_v6  ;;  %v2314_v52 = vmul.f32 %v179_v37, %v2253_v11  ;;  %v2317_v53 = vmul.f32 %v183_v38, %v2243_v6  ;;  %v2320_v54 = vmul.f32 %v183_v38, %v2253_v11 }
  0x2f   :  { %v154_v55 = vcombine.high %v144_v36, %v144_v36  ;;  %v2323_v56 = vmul.f32 %v187_v40, %v2243_v6  ;;  %v2326_v57 = vmul.f32 %v187_v40, %v2253_v11  ;;  %v275_v58 = vmax.f32 %v2284_v41, %v2287_v42 }
  0x30   :  { %v153_v59 = vcombine.high %v137_v35, %v137_v35  ;;  %v282_v60 = vmax.f32 %v2290_v43, %v2293_v44  ;;  %v289_v61 = vmax.f32 %v2296_v45, %v2299_v46  ;;  %v155_v62 = vcombine.high %v151_v47, %v151_v47 }
  0x31   :  { %v191_v63 = vrot.slane %v130_v27, %v2259_v16  ;;  %v269_v0 = vrot.slane %v268_v50, 4  ;;  %v296_v1 = vmax.f32 %v2303_v48, %v2306_v49  ;;  %v195_v2 = vrot.slane %v144_v36, %v2259_v16 }
  0x32   :  { %v199_v3 = vrot.slane %v152_v39, %v2259_v16  ;;  %v303_v4 = vmax.f32 %v2311_v51, %v2314_v52  ;;  %v310_v7 = vmax.f32 %v2317_v53, %v2320_v54  ;;  %v203_v8 = vrot.slane %v154_v55, %v2259_v16 }
  0x33   :  { %v207_v9 = vrot.slane %v137_v35, %v2259_v16  ;;  %v276_v10 = vrot.slane %v275_v58, 4  ;;  %v317_v12 = vmax.f32 %v2323_v56, %v2326_v57  ;;  %v211_v13 = vrot.slane %v151_v47, %v2259_v16 }
  0x34   :  { %v215_v14 = vrot.slane %v153_v59, %v2259_v16  ;;  %v283_v15 = vrot.slane %v282_v60, 4  ;;  %v290_v17 = vrot.slane %v289_v61, 4  ;;  %v219_v18 = vrot.slane %v155_v62, %v2259_v16 }
  0x35   :  { %v2351_v19 = vmul.f32 %v191_v63, %v2243_v6  ;;  %v270_v20 = vmax.f32 %v268_v50, %v269_v0  ;;  %v297_v21 = vrot.slane %v296_v1, 4  ;;  %v2354_v22 = vmul.f32 %v191_v63, %v2253_v11 }
  0x36   :  { %v2357_v23 = vmul.f32 %v195_v2, %v2243_v6  ;;  %v304_v24 = vrot.slane %v303_v4, 4  ;;  %v311_v25 = vrot.slane %v310_v7, 4  ;;  %v2360_v26 = vmul.f32 %v195_v2, %v2253_v11 }
  0x37   :  { %3510 = vst [vmem:[#allocation15_spill] sm:$0xff] %v2354_v22  ;;  %v2363_v27 = vmul.f32 %v199_v3, %v2243_v6  ;;  %v277_v28 = vmax.f32 %v275_v58, %v276_v10  ;;  %v318_v29 = vrot.slane %v317_v12, 4  ;;  %v2366_v30 = vmul.f32 %v199_v3, %v2253_v11 }
  0x38   :  { %3511 = vst [vmem:[#allocation16_spill] sm:$0xff] %v2357_v23  ;;  %3512 = vst [vmem:[#allocation17_spill] sm:$0xff] %v2360_v26  ;;  %v2369_v31 = vmul.f32 %v203_v8, %v2243_v6  ;;  %v284_v32 = vmax.f32 %v282_v60, %v283_v15  ;;  %v291_v35 = vmax.f32 %v289_v61, %v290_v17  ;;  %v271_v38 = vrot.slane %v270_v20, 2 }
  0x39   :  { %3513 = vst [vmem:[#allocation18_spill] sm:$0xff] %v2363_v27  ;;  %3514 = vst [vmem:[#allocation19_spill] sm:$0xff] %v2366_v30  ;;  %v2372_v36 = vmul.f32 %v203_v8, %v2253_v11  ;;  %v2375_v37 = vmul.f32 %v207_v9, %v2243_v6  ;;  %v298_v39 = vmax.f32 %v296_v1, %v297_v21  ;;  %v278_v60 = vrot.slane %v277_v28, 2 }
  0x3a   :  { %3515 = vst [vmem:[#allocation20_spill] sm:$0xff] %v2369_v31  ;;  %v2378_v40 = vmul.f32 %v207_v9, %v2253_v11  ;;  %v2381_v47 = vmul.f32 %v211_v13, %v2243_v6  ;;  %v305_v50 = vmax.f32 %v303_v4, %v304_v24  ;;  %v312_v55 = vmax.f32 %v310_v7, %v311_v25 }
  0x3b   :  { %3516 = vst [vmem:[#allocation21_spill] sm:$0xff] %v2372_v36  ;;  %3517 = vst [vmem:[#allocation22_spill] sm:$0xff] %v2375_v37  ;;  %v2384_v58 = vmul.f32 %v211_v13, %v2253_v11  ;;  %v2387_v59 = vmul.f32 %v215_v14, %v2243_v6  ;;  %v319_v61 = vmax.f32 %v317_v12, %v318_v29  ;;  %v285_v0 = vrot.slane %v284_v32, 2 }
  0x3c   :  { %3518 = vst [vmem:[#allocation23_spill] sm:$0xff] %v2378_v40  ;;  %3519 = vst [vmem:[#allocation24_spill] sm:$0xff] %v2381_v47  ;;  %v2390_v62 = vmul.f32 %v215_v14, %v2253_v11  ;;  %v2393_v63 = vmul.f32 %v219_v18, %v2243_v6  ;;  %v292_v1 = vrot.slane %v291_v35, 2  ;;  %v2396_v2 = vmul.f32 %v219_v18, %v2253_v11 }
  0x3d   :  { %3520 = vst [vmem:[#allocation25_spill] sm:$0xff] %v2384_v58  ;;  %3521 = vst [vmem:[#allocation26_spill] sm:$0xff] %v2387_v59  ;;  %v272_v3 = vmax.f32 %v270_v20, %v271_v38  ;;  %v299_v4 = vrot.slane %v298_v39, 2  ;;  %v324_v7 = vmax.f32 %v2351_v19, %v2354_v22  ;;  %v306_v8 = vrot.slane %v305_v50, 2 }
  0x3e   :  { %3522 = vst [vmem:[#allocation27_spill] sm:$0xff] %v2390_v62  ;;  %3523 = vst [vmem:[#allocation28_spill] sm:$0xff] %v2393_v63  ;;  %v313_v9 = vrot.slane %v312_v55, 2  ;;  %v331_v10 = vmax.f32 %v2357_v23, %v2360_v26  ;;  %v338_v12 = vmax.f32 %v2363_v27, %v2366_v30  ;;  %v279_v13 = vmax.f32 %v277_v28, %v278_v60 }
  0x3f   :  { %3524 = vst [vmem:[#allocation29_spill] sm:$0xff] %v2396_v2  ;;  %v320_v14 = vrot.slane %v319_v61, 2  ;;  %v345_v15 = vmax.f32 %v2369_v31, %v2372_v36  ;;  %v352_v17 = vmax.f32 %v2375_v37, %v2378_v40  ;;  %v286_v18 = vmax.f32 %v284_v32, %v285_v0 }
  0x40   :  { %v293_v20 = vmax.f32 %v291_v35, %v292_v1  ;;  %v359_v21 = vmax.f32 %v2381_v47, %v2384_v58  ;;  %v366_v24 = vmax.f32 %v2387_v59, %v2390_v62  ;;  %v273_v25 = vrot.slane %v272_v3, 1 }
  0x41   :  { %v300_v29 = vmax.f32 %v298_v39, %v299_v4  ;;  %v325_v38 = vrot.slane %v324_v7, 4  ;;  %v373_v28 = vmax.f32 %v2393_v63, %v2396_v2  ;;  %v307_v60 = vmax.f32 %v305_v50, %v306_v8 }
  0x42   :  { %v314_v16 = vmax.f32 %v312_v55, %v313_v9  ;;  %v332_v11 = vrot.slane %v331_v10, 4  ;;  %v339_v6 = vrot.slane %v338_v12, 4  ;;  %v280_v5 = vrot.slane %v279_v13, 1 }
  0x43   :  { %v321_v40 = vmax.f32 %v319_v61, %v320_v14  ;;  %v346_v32 = vrot.slane %v345_v15, 4  ;;  %v353_v35 = vrot.slane %v352_v17, 4  ;;  %v287_v0 = vrot.slane %v286_v18, 1 }
  0x44   :  { %v294_v1 = vrot.slane %v293_v20, 1  ;;  %v360_v58 = vrot.slane %v359_v21, 4  ;;  %v367_v47 = vrot.slane %v366_v24, 4  ;;  %v274_v37 = vmax.f32 %v272_v3, %v273_v25 }
  0x45   :  { %v301_v62 = vrot.slane %v300_v29, 1  ;;  %v326_v59 = vmax.f32 %v324_v7, %v325_v38  ;;  %v374_v39 = vrot.slane %v373_v28, 4  ;;  %v308_v4 = vrot.slane %v307_v60, 1 }
  0x46   :  { %v315_v36 = vrot.slane %v314_v16, 1  ;;  %v333_v31 = vmax.f32 %v331_v10, %v332_v11  ;;  %v340_v2 = vmax.f32 %v338_v12, %v339_v6  ;;  %v281_v50 = vmax.f32 %v279_v13, %v280_v5 }
  0x47   :  { %v322_v55 = vrot.slane %v321_v40, 1  ;;  %v347_v8 = vmax.f32 %v345_v15, %v346_v32  ;;  %v354_v9 = vmax.f32 %v352_v17, %v353_v35  ;;  %v288_v63 = vmax.f32 %v286_v18, %v287_v0 }
  0x48   :  { %v295_v61 = vmax.f32 %v293_v20, %v294_v1  ;;  %v361_v14 = vmax.f32 %v359_v21, %v360_v58  ;;  %v368_v30 = vmax.f32 %v366_v24, %v367_v47  ;;  %v302_v27 = vmax.f32 %v300_v29, %v301_v62 }
  0x49   :  { %v327_v26 = vrot.slane %v326_v59, 2  ;;  %v375_v23 = vmax.f32 %v373_v28, %v374_v39  ;;  %v380_v3 = vsub.f32 %v2273_v33, %v274_v37  ;;  %v309_v25 = vmax.f32 %v307_v60, %v308_v4 }
  0x4a   :  { %v334_v7 = vrot.slane %v333_v31, 2  ;;  %v341_v38 = vrot.slane %v340_v2, 2  ;;  %v381_v22 = vsub.f32 %v2276_v34, %v274_v37  ;;  %v2416_v11 = vmax.f32 %v314_v16, %v315_v36 }
  0x4b   :  { %v348_v5 = vrot.slane %v347_v8, 2  ;;  %v355_v6 = vrot.slane %v354_v9, 2  ;;  %v382_v10 = vsub.f32 %v2284_v41, %v281_v50  ;;  %v2419_v12 = vmax.f32 %v321_v40, %v322_v55  ;;  %v3525_v55 = vld [vmem:[#allocation15_spill] sm:$0xff] }
  0x4c   :  { %v362_v58 = vrot.slane %v361_v14, 2  ;;  %v369_v47 = vrot.slane %v368_v30, 2  ;;  %v383_v62 = vsub.f32 %v2287_v42, %v281_v50  ;;  %v328_v13 = vmax.f32 %v326_v59, %v327_v26 }
  0x4d   :  { %v376_v15 = vrot.slane %v375_v23, 2  ;;  %v384_v33 = vsub.f32 %v2290_v43, %v288_v63  ;;  %v412_v17 = vmul.f32 1.442695, %v380_v3  ;;  %v335_v18 = vmax.f32 %v333_v31, %v334_v7 }
  0x4e   :  { %v342_v20 = vmax.f32 %v340_v2, %v341_v38  ;;  %v385_v16 = vsub.f32 %v2293_v44, %v288_v63  ;;  %v414_v34 = vmul.f32 1.442695, %v381_v22  ;;  %v349_v36 = vmax.f32 %v347_v8, %v348_v5 }
  0x4f   :  { %v356_v37 = vmax.f32 %v354_v9, %v355_v6  ;;  %v386_v41 = vsub.f32 %v2296_v45, %v295_v61  ;;  %v416_v40 = vmul.f32 1.442695, %v382_v10  ;;  %v363_v21 = vmax.f32 %v361_v14, %v362_v58 }
  0x50   :  { %v2425_v24 = vmax.f32 %v368_v30, %v369_v47  ;;  %v387_v42 = vsub.f32 %v2299_v46, %v295_v61  ;;  %v418_v26 = vmul.f32 1.442695, %v383_v62  ;;  %v329_v59 = vrot.slane %v328_v13, 1 }
  0x51   :  { %v388_v43 = vsub.f32 %v2303_v48, %v302_v27  ;;  %1906 = vpow2.f32 %v412_v17  ;;  %v420_v31 = vmul.f32 1.442695, %v384_v33  ;;  %v2429_v2 = vmax.f32 %v375_v23, %v376_v15  ;;  %v3530_v15 = vld [vmem:[#allocation20_spill] sm:$0xff] }
  0x52   :  { %v389_v44 = vsub.f32 %v2306_v49, %v302_v27  ;;  %1908 = vpow2.f32 %v414_v34  ;;  %v422_v22 = vmul.f32 1.442695, %v385_v16  ;;  %v336_v63 = vrot.slane %v335_v18, 1  ;;  %v3531_v16 = vld [vmem:[#allocation21_spill] sm:$0xff] }
  0x53   :  { %v390_v45 = vsub.f32 %v2311_v51, %v309_v25  ;;  %1910 = vpow2.f32 %v416_v40  ;;  %v424_v30 = vmul.f32 1.442695, %v386_v41  ;;  %v343_v29 = vrot.slane %v342_v20, 1  ;;  %v3532_v40 = vld [vmem:[#allocation22_spill] sm:$0xff] }
  0x54   :  { %v391_v46 = vsub.f32 %v2314_v52, %v309_v25  ;;  %1912 = vpow2.f32 %v418_v26  ;;  %v426_v28 = vmul.f32 1.442695, %v387_v42  ;;  %v330_v60 = vmax.f32 %v328_v13, %v329_v59  ;;  %v2464_v59 = vld [vmem:[#allocation2] sm:$0xff] }
  0x55   :  { %v392_v48 = vsub.f32 %v2317_v53, %v2416_v11  ;;  %1914 = vpow2.f32 %v420_v31  ;;  %v428_v23 = vmul.f32 1.442695, %v388_v43  ;;  %v350_v32 = vrot.slane %v349_v36, 1  ;;  %3533 = vst [vmem:[#allocation15_spill] sm:$0xff] %v2464_v59  ;;  %v3534_v43 = vld [vmem:[#allocation23_spill] sm:$0xff] }
  0x56   :  { %v393_v49 = vsub.f32 %v2320_v54, %v2416_v11  ;;  %1916 = vpow2.f32 %v422_v22  ;;  %v430_v27 = vmul.f32 1.442695, %v389_v44  ;;  %v337_v51 = vmax.f32 %v335_v18, %v336_v63  ;;  %v3535_v63 = vld [vmem:[#allocation24_spill] sm:$0xff] }
  0x57   :  { %v394_v35 = vsub.f32 %v2323_v56, %v2419_v12  ;;  %1918 = vpow2.f32 %v424_v30  ;;  %v432_v52 = vmul.f32 1.442695, %v390_v45  ;;  %v357_v0 = vrot.slane %v356_v37, 1  ;;  %v3526_v56 = vld [vmem:[#allocation16_spill] sm:$0xff] }
  0x58   :  { %v395_v1 = vsub.f32 %v2326_v57, %v2419_v12  ;;  %1920 = vpow2.f32 %v426_v28  ;;  %v434_v53 = vmul.f32 1.442695, %v391_v46  ;;  %v344_v39 = vmax.f32 %v342_v20, %v343_v29  ;;  %v3527_v57 = vld [vmem:[#allocation17_spill] sm:$0xff]  ;;  %v3529_v12 = vld [vmem:[#allocation19_spill] sm:$0xff] }
  0x59   :  { %v396_v4 = vsub.f32 %v2351_v19, %v330_v60  ;;  %1922 = vpow2.f32 %v428_v23  ;;  %v436_v50 = vmul.f32 1.442695, %v392_v48  ;;  %v364_v54 = vrot.slane %v363_v21, 1  ;;  %v3528_v19 = vld [vmem:[#allocation18_spill] sm:$0xff]  ;;  %v3536_v28 = vld [vmem:[#allocation25_spill] sm:$0xff] }
  0x5a   :  { %v397_v8 = vsub.f32 %v3525_v55, %v330_v60  ;;  %1924 = vpow2.f32 %v430_v27  ;;  %v438_v9 = vmul.f32 1.442695, %v393_v49  ;;  %v351_v61 = vmax.f32 %v349_v36, %v350_v32  ;;  %v3537_v32 = vld [vmem:[#allocation26_spill] sm:$0xff]  ;;  %v3541_v55 = vld [vmem:[#allocation28_spill] sm:$0xff] }
  0x5b   :  { %v398_v14 = vsub.f32 %v3526_v56, %v337_v51  ;;  %1926 = vpow2.f32 %v432_v52  ;;  %v440_v3 = vmul.f32 1.442695, %v394_v35  ;;  %v371_v25 = vrot.slane %v2425_v24, 1  ;;  %v3538_v35 = vld [vmem:[#allocation27_spill] sm:$0xff] }
  0x5c   :  { %v399_v7 = vsub.f32 %v3527_v57, %v337_v51  ;;  %1928 = vpow2.f32 %v434_v53  ;;  %v442_v38 = vmul.f32 1.442695, %v395_v1  ;;  %v358_v11 = vmax.f32 %v356_v37, %v357_v0  ;;  %v2484_v53 = vld [vmem:[#allocation2 + $0x8] sm:$0xff] }
  0x5d   :  { %v400_v5 = vsub.f32 %v3528_v19, %v344_v39  ;;  %1930 = vpow2.f32 %v436_v50  ;;  %v444_v6 = vmul.f32 1.442695, %v396_v4  ;;  %v401_v58 = vsub.f32 %v3529_v12, %v344_v39  ;;  %3539 = vst [vmem:[#allocation16_spill] sm:$0xff] %v2484_v53  ;;  %v3540_v39 = vld [vmem:[#allocation11_spill] sm:$0xff] }
  0x5e   :  { %v2448_v10 = vpop.eup %1906  ;;  %1932 = vpow2.f32 %v438_v9  ;;  %v446_v47 = vmul.f32 1.442695, %v397_v8  ;;  %v365_v13 = vmax.f32 %v363_v21, %v364_v54  ;;  %v402_v33 = vsub.f32 %v3530_v15, %v351_v61 }
  0x5f   :  { %v2451_v62 = vpop.eup %1908  ;;  %1934 = vpow2.f32 %v440_v3  ;;  %v448_v17 = vmul.f32 1.442695, %v398_v14  ;;  %v378_v20 = vrot.slane %v2429_v2, 1  ;;  %v403_v34 = vsub.f32 %v3531_v16, %v351_v61  ;;  %v3542_v14 = vld [vmem:[#allocation29_spill] sm:$0xff] }
  0x60   :  { %v2454_v18 = vpop.eup %1910  ;;  %1936 = vpow2.f32 %v442_v38  ;;  %v450_v36 = vmul.f32 1.442695, %v399_v7  ;;  %v372_v41 = vmax.f32 %v2425_v24, %v371_v25  ;;  %v404_v42 = vsub.f32 %v3532_v40, %v358_v11 }
  0x61   :  { %v2458_v37 = vpop.eup %1912  ;;  %1938 = vpow2.f32 %v444_v6  ;;  %v452_v21 = vmul.f32 1.442695, %v400_v5  ;;  %v405_v31 = vsub.f32 %v3534_v43, %v358_v11  ;;  %v454_v44 = vmul.f32 1.442695, %v401_v58 }
  0x62   :  { %v2462_v26 = vpop.eup %1914  ;;  %1940 = vpow2.f32 %v446_v47  ;;  %v406_v45 = vsub.f32 %v3535_v63, %v365_v13  ;;  %v456_v30 = vmul.f32 1.442695, %v402_v33  ;;  %v807_v24 = vcombine.high %v2464_v59, %v2464_v59  ;;  %v3548_v63 = vld [vmem:[#allocation13_spill] sm:$0xff] }
  0x63   :  { %v2467_v22 = vpop.eup %1916  ;;  %1942 = vpow2.f32 %v448_v17  ;;  %v379_v46 = vmax.f32 %v2429_v2, %v378_v20  ;;  %v407_v60 = vsub.f32 %v3536_v28, %v365_v13  ;;  %v458_v48 = vmul.f32 1.442695, %v403_v34 }
  0x64   :  { %v2472_v29 = vpop.eup %1918  ;;  %1944 = vpow2.f32 %v450_v36  ;;  %v408_v49 = vsub.f32 %v3537_v32, %v372_v41  ;;  %v460_v27 = vmul.f32 1.442695, %v404_v42  ;;  %v409_v52 = vsub.f32 %v3538_v35, %v372_v41 }
  0x65   :  { %v2476_v23 = vpop.eup %1920  ;;  %1946 = vpow2.f32 %v452_v21  ;;  %v462_v0 = vmul.f32 1.442695, %v405_v31  ;;  %v464_v2 = vmul.f32 1.442695, %v406_v45  ;;  %v814_v4 = vrot.slane %v2464_v59, %v3540_v39  ;;  %v3547_v31 = vld [vmem:[#allocation12_spill] sm:$0xff] }
  0x66   :  { %v2479_v51 = vpop.eup %1922  ;;  %1948 = vpow2.f32 %v454_v44  ;;  %v821_v50 = vrot.slane %v807_v24, %v3540_v39  ;;  %v410_v8 = vsub.f32 %v3541_v55, %v379_v46  ;;  %v466_v9 = vmul.f32 1.442695, %v407_v60 }
  0x67   :  { %v2482_v1 = vpop.eup %1924  ;;  %1950 = vpow2.f32 %v456_v30  ;;  %v856_v61 = vcombine.high %v2484_v53, %v2484_v53  ;;  %v411_v3 = vsub.f32 %v3542_v14, %v379_v46  ;;  %v468_v25 = vmul.f32 1.442695, %v408_v49 }
  0x68   :  { %v2489_v54 = vpop.eup %1926  ;;  %1952 = vpow2.f32 %v458_v48  ;;  %v470_v7 = vmul.f32 1.442695, %v409_v52  ;;  %v822_v11 = vcombine.high %v814_v4, %v814_v4  ;;  %v823_v19 = vcombine.high %v821_v50, %v821_v50 }
  0x69   :  { %v2494_v56 = vpop.eup %1928  ;;  %1954 = vpow2.f32 %v460_v27  ;;  %v472_v6 = vmul.f32 1.442695, %v410_v8  ;;  %v863_v12 = vrot.slane %v2484_v53, %v3540_v39  ;;  %v870_v58 = vrot.slane %v856_v61, %v3540_v39 }
  0x6a   :  { %v2497_v57 = vpop.eup %1930  ;;  %1956 = vpow2.f32 %v462_v0  ;;  %v474_v13 = vmul.f32 1.442695, %v411_v3  ;;  %v476_v15 = vadd.f32 %v2451_v62, %v2448_v10  ;;  %v2513_v17 = vrot.slane %v814_v4, %v3540_v39 }
  0x6b   :  { %v2499_v38 = vpop.eup %1932  ;;  %1958 = vpow2.f32 %v464_v2  ;;  %v2516_v20 = vrot.slane %v821_v50, %v3540_v39  ;;  %v2521_v34 = vrot.slane %v822_v11, %v3540_v39  ;;  %v2524_v36 = vrot.slane %v823_v19, %v3540_v39 }
  0x6c   :  { %v2501_v5 = vpop.eup %1934  ;;  %1960 = vpow2.f32 %v466_v9  ;;  %3543 = vst [vmem:[#allocation17_spill] sm:$0xff] %v2513_v17  ;;  %v871_v40 = vcombine.high %v863_v12, %v863_v12  ;;  %v872_v42 = vcombine.high %v870_v58, %v870_v58  ;;  %v477_v43 = vrot.slane %v476_v15, 4 }
  0x6d   :  { %v2506_v47 = vpop.eup %1936  ;;  %1962 = vpow2.f32 %v468_v25  ;;  %3544 = vst [vmem:[#allocation18_spill] sm:$0xff] %v2516_v20  ;;  %3545 = vst [vmem:[#allocation19_spill] sm:$0xff] %v2521_v34  ;;  %v588_v44 = vmul.f32 %v2448_v10, %v3547_v31  ;;  %v589_v45 = vmul.f32 %v2451_v62, %v3548_v63  ;;  %v483_v24 = vadd.f32 %v2458_v37, %v2454_v18 }
  0x6e   :  { %v2510_v33 = vpop.eup %1938  ;;  %1964 = vpow2.f32 %v470_v7  ;;  %3546 = vst [vmem:[#allocation20_spill] sm:$0xff] %v2524_v36  ;;  %v490_v46 = vadd.f32 %v2467_v22, %v2462_v26  ;;  %v2551_v32 = vrot.slane %v863_v12, %v3540_v39  ;;  %v2554_v49 = vrot.slane %v870_v58, %v3540_v39 }
  0x6f   :  { %v2518_v16 = vpop.eup %1940  ;;  %1966 = vpow2.f32 %v472_v6  ;;  %v497_v35 = vadd.f32 %v2476_v23, %v2472_v29  ;;  %v2562_v52 = vmul.f32 %v2454_v18, %v3547_v31  ;;  %v2565_v0 = vrot.slane %v871_v40, %v3540_v39 }
  0x70   :  { %v2526_v41 = vpop.eup %1942  ;;  %1968 = vpow2.f32 %v474_v13  ;;  %3549 = vst [vmem:[#allocation21_spill] sm:$0xff] %v2551_v32  ;;  %3550 = vst [vmem:[#allocation22_spill] sm:$0xff] %v2554_v49  ;;  %v2568_v2 = vrot.slane %v872_v42, %v3540_v39  ;;  %v478_v50 = vadd.f32 %v477_v43, %v476_v15  ;;  %v504_v55 = vadd.f32 %v2482_v1, %v2479_v51 }
  0x71   :  { %v2528_v21 = vpop.eup %1944  ;;  %3551 = vst [vmem:[#allocation23_spill] sm:$0xff] %v2562_v52  ;;  %3552 = vst [vmem:[#allocation24_spill] sm:$0xff] %v2565_v0  ;;  %v2576_v8 = vmul.f32 %v2458_v37, %v3548_v63  ;;  %v2578_v9 = vadd.f32 %v589_v45, %v588_v44  ;;  %v484_v61 = vrot.slane %v483_v24, 4  ;;  %v491_v14 = vrot.slane %v490_v46, 4 }
  0x72   :  { %v2534_v30 = vpop.eup %1946  ;;  %3553 = vst [vmem:[#allocation25_spill] sm:$0xff] %v2568_v2  ;;  %v511_v39 = vadd.f32 %v2494_v56, %v2489_v54  ;;  %v2586_v3 = vmul.f32 %v2462_v26, %v3547_v31  ;;  %v518_v7 = vadd.f32 %v2499_v38, %v2497_v57  ;;  %v525_v37 = vadd.f32 %v2506_v47, %v2501_v5 }
  0x73   :  { %v2544_v48 = vpop.eup %1948  ;;  %3554 = vst [vmem:[#allocation26_spill] sm:$0xff] %v2576_v8  ;;  %3555 = vst [vmem:[#allocation27_spill] sm:$0xff] %v2578_v9  ;;  %v2596_v11 = vmul.f32 %v2467_v22, %v3548_v63  ;;  %v498_v12 = vrot.slane %v497_v35, 4  ;;  %v532_v26 = vadd.f32 %v2518_v16, %v2510_v33  ;;  %v539_v58 = vadd.f32 %v2528_v21, %v2526_v41 }
  0x74   :  { %v2556_v27 = vpop.eup %1950  ;;  %3556 = vst [vmem:[#allocation11_spill] sm:$0xff] %v2586_v3  ;;  %v2608_v13 = vmul.f32 %v2472_v29, %v3547_v31  ;;  %v479_v22 = vrot.slane %v478_v50, 2  ;;  %v505_v40 = vrot.slane %v504_v55, 4  ;;  %v546_v42 = vadd.f32 %v2544_v48, %v2534_v30 }
  0x75   :  { %v2570_v4 = vpop.eup %1952  ;;  %3557 = vst [vmem:[#allocation28_spill] sm:$0xff] %v2596_v11  ;;  %v485_v45 = vadd.f32 %v484_v61, %v483_v24  ;;  %v492_v19 = vadd.f32 %v491_v14, %v490_v46  ;;  %v512_v62 = vrot.slane %v511_v39, 4  ;;  %v2619_v60 = vmul.f32 %v2476_v23, %v3548_v63 }
  0x76   :  { %v2580_v18 = vpop.eup %1954  ;;  %3558 = vst [vmem:[#allocation29_spill] sm:$0xff] %v2608_v13  ;;  %v519_v10 = vrot.slane %v518_v7, 4  ;;  %v526_v28 = vrot.slane %v525_v37, 4  ;;  %v553_v53 = vadd.f32 %v2570_v4, %v2556_v27  ;;  %v2627_v59 = vmul.f32 %v2479_v51, %v3547_v31 }
  0x77   :  { %v2588_v25 = vpop.eup %1956  ;;  %3561 = vst [vmem:[#allocation30_spill] sm:$0xff] %v2619_v60  ;;  %v499_v43 = vadd.f32 %v498_v12, %v497_v35  ;;  %v533_v32 = vrot.slane %v532_v26, 4  ;;  %v540_v24 = vrot.slane %v539_v58, 4  ;;  %v480_v23 = vadd.f32 %v479_v22, %v478_v50 }
  0x78   :  { %v2600_v6 = vpop.eup %1958  ;;  %3563 = vst [vmem:[#allocation32_spill] sm:$0xff] %v2627_v59  ;;  %v560_v46 = vadd.f32 %v2588_v25, %v2580_v18  ;;  %v506_v14 = vadd.f32 %v505_v40, %v504_v55  ;;  %v547_v36 = vrot.slane %v546_v42, 4  ;;  %v486_v17 = vrot.slane %v485_v45, 2 }
  0x79   :  { %v2610_v15 = vpop.eup %1960  ;;  %v493_v2 = vrot.slane %v492_v19, 2  ;;  %v513_v51 = vadd.f32 %v512_v62, %v511_v39  ;;  %v520_v12 = vadd.f32 %v519_v10, %v518_v7  ;;  %v527_v0 = vadd.f32 %v526_v28, %v525_v37 }
  0x7a   :  { %3559 = vst [vmem:[#allocation12_spill] sm:$0xff] %v2610_v15  ;;  %v2615_v44 = vpop.eup %1962  ;;  %v567_v20 = vadd.f32 %v2610_v15, %v2600_v6  ;;  %v554_v49 = vrot.slane %v553_v53, 4  ;;  %v2641_v59 = vmul.f32 %v2482_v1, %v3548_v63  ;;  %v500_v50 = vrot.slane %v499_v43, 2 }
  0x7b   :  { %3560 = vst [vmem:[#allocation13_spill] sm:$0xff] %v2615_v44  ;;  %v2621_v29 = vpop.eup %1964  ;;  %v534_v55 = vadd.f32 %v533_v32, %v532_v26  ;;  %v541_v22 = vadd.f32 %v540_v24, %v539_v58  ;;  %v561_v40 = vrot.slane %v560_v46, 4  ;;  %v507_v60 = vrot.slane %v506_v14, 2 }
  0x7c   :  { %3562 = vst [vmem:[#allocation31_spill] sm:$0xff] %v2621_v29  ;;  %v2631_v61 = vpop.eup %1966  ;;  %v574_v35 = vadd.f32 %v2621_v29, %v2615_v44  ;;  %3566 = vst [vmem:[#allocation35_spill] sm:$0xff] %v2641_v59  ;;  %v548_v13 = vadd.f32 %v547_v36, %v546_v42  ;;  %v568_v9 = vrot.slane %v567_v20, 4  ;;  %v487_v39 = vadd.f32 %v486_v17, %v485_v45 }
  0x7d   :  { %3564 = vst [vmem:[#allocation33_spill] sm:$0xff] %v2631_v61  ;;  %v2635_v34 = vpop.eup %1968  ;;  %v494_v11 = vadd.f32 %v493_v2, %v492_v19  ;;  %v514_v3 = vrot.slane %v513_v51, 2  ;;  %v481_v28 = vrot.slane %v480_v23, 1  ;;  %v521_v7 = vrot.slane %v520_v12, 2 }
  0x7e   :  { %3565 = vst [vmem:[#allocation34_spill] sm:$0xff] %v2635_v34  ;;  %v581_v62 = vadd.f32 %v2635_v34, %v2631_v61  ;;  %v575_v10 = vrot.slane %v574_v35, 4  ;;  %v528_v37 = vrot.slane %v527_v0, 2  ;;  %v555_v29 = vadd.f32 %v554_v49, %v553_v53 }
  0x7f   :  { %v501_v1 = vadd.f32 %v500_v50, %v499_v43  ;;  %v535_v59 = vrot.slane %v534_v55, 2  ;;  %v542_v8 = vrot.slane %v541_v22, 2  ;;  %v562_v32 = vadd.f32 %v561_v40, %v560_v46 }
  0x80   :  { %v508_v26 = vadd.f32 %v507_v60, %v506_v14  ;;  %v549_v58 = vrot.slane %v548_v13, 2  ;;  %v569_v24 = vadd.f32 %v568_v9, %v567_v20  ;;  %v582_v36 = vrot.slane %v581_v62, 4 }
  0x81   :  { %v488_v42 = vrot.slane %v487_v39, 1  ;;  %v495_v52 = vrot.slane %v494_v11, 1  ;;  %v515_v44 = vadd.f32 %v514_v3, %v513_v51  ;;  %v576_v34 = vadd.f32 %v575_v10, %v574_v35 }
  0x82   :  { %v2645_v17 = vadd.f32 %v481_v28, %v480_v23  ;;  %v522_v2 = vadd.f32 %v521_v7, %v520_v12  ;;  %v529_v19 = vadd.f32 %v528_v37, %v527_v0  ;;  %v556_v45 = vrot.slane %v555_v29, 2 }
  0x83   :  { %v502_v61 = vrot.slane %v501_v1, 1  ;;  %v536_v15 = vadd.f32 %v535_v59, %v534_v55  ;;  %v543_v53 = vadd.f32 %v542_v8, %v541_v22  ;;  %v563_v49 = vrot.slane %v562_v32, 2 }
  0x84   :  { %v509_v43 = vrot.slane %v508_v26, 1  ;;  %v550_v50 = vadd.f32 %v549_v58, %v548_v13  ;;  %v570_v46 = vrot.slane %v569_v24, 2  ;;  %v583_v60 = vadd.f32 %v582_v36, %v581_v62 }
  0x85   :  { %v2647_v14 = vadd.f32 %v488_v42, %v487_v39  ;;  %v2649_v20 = vadd.f32 %v495_v52, %v494_v11  ;;  %v516_v9 = vrot.slane %v515_v44, 1  ;;  %v577_v3 = vrot.slane %v576_v34, 2 }
  0x86   :  { %v523_v51 = vrot.slane %v522_v2, 1  ;;  %v530_v23 = vrot.slane %v529_v19, 1  ;;  %v557_v35 = vadd.f32 %v556_v45, %v555_v29  ;;  %v598_v0 = vmul.f32 %v2489_v54, %v3547_v31  ;;  %v3567_v45 = vld [vmem:[#allocation12_spill] sm:$0xff] }
  0x87   :  { %v2653_v12 = vadd.f32 %v502_v61, %v501_v1  ;;  %v537_v59 = vrot.slane %v536_v15, 1  ;;  %v544_v8 = vrot.slane %v543_v53, 1  ;;  %v564_v55 = vadd.f32 %v563_v49, %v562_v32  ;;  %v3569_v49 = vld [vmem:[#allocation23_spill] sm:$0xff] }
  0x88   :  { %v2655_v13 = vadd.f32 %v509_v43, %v508_v26  ;;  %v551_v22 = vrot.slane %v550_v50, 1  ;;  %v571_v40 = vadd.f32 %v570_v46, %v569_v24  ;;  %v584_v62 = vrot.slane %v583_v60, 2  ;;  %v3570_v43 = vld [vmem:[#allocation26_spill] sm:$0xff] }
  0x89   :  { %v2657_v52 = vadd.f32 %v516_v9, %v515_v44  ;;  %v578_v11 = vadd.f32 %v577_v3, %v576_v34  ;;  %v599_v39 = vmul.f32 %v2494_v56, %v3548_v63  ;;  %v600_v29 = vmul.f32 %v2497_v57, %v3547_v31  ;;  %v3573_v9 = vld [vmem:[#allocation34_spill] sm:$0xff]  ;;  %v3574_v3 = vld [vmem:[#allocation11_spill] sm:$0xff] }
  0x8a   :  { %v2663_v54 = vadd.f32 %v523_v51, %v522_v2  ;;  %v2665_v61 = vadd.f32 %v530_v23, %v529_v19  ;;  %v558_v10 = vrot.slane %v557_v35, 1  ;;  %v601_v28 = vmul.f32 %v2499_v38, %v3548_v63  ;;  %v3575_v51 = vld [vmem:[#allocation28_spill] sm:$0xff] }
  0x8b   :  { %v2669_v7 = vadd.f32 %v537_v59, %v536_v15  ;;  %v2671_v37 = vadd.f32 %v544_v8, %v543_v53  ;;  %v565_v44 = vrot.slane %v564_v55, 1  ;;  %v602_v34 = vmul.f32 %v2501_v5, %v3547_v31  ;;  %v3568_v53 = vld [vmem:[#allocation13_spill] sm:$0xff] }
  0x8c   :  { %v2675_v56 = vadd.f32 %v551_v22, %v550_v50  ;;  %v572_v1 = vrot.slane %v571_v40, 1  ;;  %v585_v57 = vadd.f32 %v584_v62, %v583_v60  ;;  %v603_v32 = vmul.f32 %v2506_v47, %v3548_v63  ;;  %v3571_v50 = vld [vmem:[#allocation31_spill] sm:$0xff]  ;;  %v3572_v60 = vld [vmem:[#allocation33_spill] sm:$0xff]  ;;  %v3579_v22 = vld [vmem:[#allocation30_spill] sm:$0xff] }
  0x8d   :  { %v579_v26 = vrot.slane %v578_v11, 1  ;;  %v604_v58 = vmul.f32 %v2510_v33, %v3547_v31  ;;  %v605_v38 = vmul.f32 %v2518_v16, %v3548_v63  ;;  %v606_v15 = vmul.f32 %v2526_v41, %v3547_v31  ;;  %v3580_v62 = vld [vmem:[#allocation32_spill] sm:$0xff] }
  0x8e   :  { %v2685_v24 = vadd.f32 %v558_v10, %v557_v35  ;;  %v607_v5 = vmul.f32 %v2528_v21, %v3548_v63  ;;  %v608_v36 = vmul.f32 %v2534_v30, %v3547_v31  ;;  %v609_v47 = vmul.f32 %v2544_v48, %v3548_v63  ;;  %v3576_v35 = vld [vmem:[#allocation27_spill] sm:$0xff] }
  0x8f   :  { %v2693_v42 = vadd.f32 %v565_v44, %v564_v55  ;;  %v610_v33 = vmul.f32 %v2556_v27, %v3547_v31  ;;  %v611_v16 = vmul.f32 %v2570_v4, %v3548_v63  ;;  %v612_v41 = vmul.f32 %v2580_v18, %v3547_v31  ;;  %v3578_v55 = vld [vmem:[#allocation29_spill] sm:$0xff] }
  0x90   :  { %v2701_v2 = vadd.f32 %v572_v1, %v571_v40  ;;  %v586_v21 = vrot.slane %v585_v57, 1  ;;  %v613_v30 = vmul.f32 %v2588_v25, %v3548_v63  ;;  %v614_v48 = vmul.f32 %v2600_v6, %v3547_v31 }
  0x91   :  { %v2707_v19 = vadd.f32 %v579_v26, %v578_v11  ;;  %v615_v27 = vmul.f32 %v3567_v45, %v3548_v63  ;;  %v616_v4 = vmul.f32 %v3568_v53, %v3547_v31  ;;  %v627_v18 = vadd.f32 %v3570_v43, %v3569_v49  ;;  %v3581_v11 = vld [vmem:[#allocation35_spill] sm:$0xff] }
  0x92   :  { %v617_v46 = vmul.f32 %v3571_v50, %v3548_v63  ;;  %v618_v25 = vmul.f32 %v3572_v60, %v3547_v31  ;;  %v619_v6 = vmul.f32 %v3573_v9, %v3548_v63  ;;  %v634_v23 = vadd.f32 %v3575_v51, %v3574_v3 }
  0x93   :  { %v3577_v59 = vrot.slane %v3576_v35, 4  ;;  %v641_v40 = vadd.f32 %v3579_v22, %v3578_v55  ;;  %v648_v10 = vadd.f32 %v3581_v11, %v3580_v62  ;;  %v655_v44 = vadd.f32 %v599_v39, %v598_v0 }
  0x94   :  { %v2730_v1 = vadd.f32 %v586_v21, %v585_v57  ;;  %v662_v31 = vadd.f32 %v601_v28, %v600_v29  ;;  %v669_v26 = vadd.f32 %v603_v32, %v602_v34  ;;  %v676_v45 = vadd.f32 %v605_v38, %v604_v58 }
  0x95   :  { %v622_v8 = vadd.f32 %v3577_v59, %v3576_v35  ;;  %v628_v63 = vrot.slane %v627_v18, 4  ;;  %v683_v53 = vadd.f32 %v607_v5, %v606_v15  ;;  %v690_v49 = vadd.f32 %v609_v47, %v608_v36 }
  0x96   :  { %3582 = vst [vmem:[#allocation12_spill] sm:$0xff] %v2730_v1  ;;  %v697_v43 = vadd.f32 %v611_v16, %v610_v33  ;;  %v635_v50 = vrot.slane %v634_v23, 4  ;;  %v704_v60 = vadd.f32 %v613_v30, %v612_v41  ;;  %v711_v9 = vadd.f32 %v615_v27, %v614_v48 }
  0x97   :  { %v718_v3 = vadd.f32 %v617_v46, %v616_v4  ;;  %v642_v51 = vrot.slane %v641_v40, 4  ;;  %v649_v35 = vrot.slane %v648_v10, 4  ;;  %v656_v59 = vrot.slane %v655_v44, 4 }
  0x98   :  { %v725_v55 = vadd.f32 %v619_v6, %v618_v25  ;;  %v623_v22 = vrot.slane %v622_v8, 2  ;;  %v663_v62 = vrot.slane %v662_v31, 4  ;;  %v670_v0 = vrot.slane %v669_v26, 4 }
  0x99   :  { %v677_v39 = vrot.slane %v676_v45, 4  ;;  %v629_v57 = vadd.f32 %v628_v63, %v627_v18  ;;  %v684_v29 = vrot.slane %v683_v53, 4  ;;  %v691_v28 = vrot.slane %v690_v49, 4 }
  0x9a   :  { %v698_v34 = vrot.slane %v697_v43, 4  ;;  %v636_v32 = vadd.f32 %v635_v50, %v634_v23  ;;  %v705_v58 = vrot.slane %v704_v60, 4  ;;  %v712_v38 = vrot.slane %v711_v9, 4 }
  0x9b   :  { %v719_v15 = vrot.slane %v718_v3, 4  ;;  %v643_v5 = vadd.f32 %v642_v51, %v641_v40  ;;  %v650_v36 = vadd.f32 %v649_v35, %v648_v10  ;;  %v657_v47 = vadd.f32 %v656_v59, %v655_v44 }
  0x9c   :  { %v726_v33 = vrot.slane %v725_v55, 4  ;;  %v624_v16 = vadd.f32 %v623_v22, %v622_v8  ;;  %v664_v41 = vadd.f32 %v663_v62, %v662_v31  ;;  %v671_v21 = vadd.f32 %v670_v0, %v669_v26 }
  0x9d   :  { %v678_v30 = vadd.f32 %v677_v39, %v676_v45  ;;  %v630_v48 = vrot.slane %v629_v57, 2  ;;  %v685_v27 = vadd.f32 %v684_v29, %v683_v53  ;;  %v692_v4 = vadd.f32 %v691_v28, %v690_v49 }
  0x9e   :  { %v699_v46 = vadd.f32 %v698_v34, %v697_v43  ;;  %v637_v18 = vrot.slane %v636_v32, 2  ;;  %v706_v25 = vadd.f32 %v705_v58, %v704_v60  ;;  %v713_v6 = vadd.f32 %v712_v38, %v711_v9 }
  0x9f   :  { %v720_v11 = vadd.f32 %v719_v15, %v718_v3  ;;  %v644_v23 = vrot.slane %v643_v5, 2  ;;  %v651_v63 = vrot.slane %v650_v36, 2  ;;  %v658_v50 = vrot.slane %v657_v47, 2 }
  0xa0   :  { %v727_v1 = vadd.f32 %v726_v33, %v725_v55  ;;  %v625_v40 = vrot.slane %v624_v16, 1  ;;  %v665_v10 = vrot.slane %v664_v41, 2  ;;  %v672_v44 = vrot.slane %v671_v21, 2 }
  0xa1   :  { %v679_v51 = vrot.slane %v678_v30, 2  ;;  %v631_v8 = vadd.f32 %v630_v48, %v629_v57  ;;  %v686_v31 = vrot.slane %v685_v27, 2  ;;  %v693_v26 = vrot.slane %v692_v4, 2 }
  0xa2   :  { %v700_v45 = vrot.slane %v699_v46, 2  ;;  %v638_v35 = vadd.f32 %v637_v18, %v636_v32  ;;  %v707_v53 = vrot.slane %v706_v25, 2  ;;  %v714_v49 = vrot.slane %v713_v6, 2 }
  0xa3   :  { %v721_v43 = vrot.slane %v720_v11, 2  ;;  %v645_v59 = vadd.f32 %v644_v23, %v643_v5  ;;  %v652_v60 = vadd.f32 %v651_v63, %v650_v36  ;;  %v659_v9 = vadd.f32 %v658_v50, %v657_v47 }
  0xa4   :  { %v728_v3 = vrot.slane %v727_v1, 2  ;;  %v2732_v22 = vadd.f32 %v625_v40, %v624_v16  ;;  %v666_v62 = vadd.f32 %v665_v10, %v664_v41  ;;  %v673_v55 = vadd.f32 %v672_v44, %v671_v21 }
  0xa5   :  { %v680_v0 = vadd.f32 %v679_v51, %v678_v30  ;;  %v632_v39 = vrot.slane %v631_v8, 1  ;;  %v687_v29 = vadd.f32 %v686_v31, %v685_v27  ;;  %v694_v28 = vadd.f32 %v693_v26, %v692_v4  ;;  %v3588_v26 = vld [vmem:[#allocation22_spill] sm:$0xff] }
  0xa6   :  { %v701_v57 = vadd.f32 %v700_v45, %v699_v46  ;;  %v639_v34 = vrot.slane %v638_v35, 1  ;;  %v708_v58 = vadd.f32 %v707_v53, %v706_v25  ;;  %v715_v38 = vadd.f32 %v714_v49, %v713_v6  ;;  %v3589_v45 = vld [vmem:[#allocation24_spill] sm:$0xff]  ;;  %v3590_v53 = vld [vmem:[#allocation25_spill] sm:$0xff] }
  0xa7   :  { %v722_v32 = vadd.f32 %v721_v43, %v720_v11  ;;  %v646_v15 = vrot.slane %v645_v59, 1  ;;  %v653_v33 = vrot.slane %v652_v60, 1  ;;  %v660_v48 = vrot.slane %v659_v9, 1  ;;  %v3591_v43 = vld [vmem:[#allocation14_spill] sm:$0xff] }
  0xa8   :  { %v729_v5 = vadd.f32 %v728_v3, %v727_v1  ;;  %v667_v36 = vrot.slane %v666_v62, 1  ;;  %v674_v47 = vrot.slane %v673_v55, 1  ;;  %v681_v18 = vrot.slane %v680_v0, 1 }
  0xa9   :  { %1970 = vrcp.f32 %v2645_v17  ;;  %v688_v16 = vrot.slane %v687_v29, 1  ;;  %v695_v41 = vrot.slane %v694_v28, 1  ;;  %v702_v21 = vrot.slane %v701_v57, 1 }
  0xaa   :  { %1972 = vrcp.f32 %v2647_v14  ;;  %v2736_v30 = vadd.f32 %v632_v39, %v631_v8  ;;  %v709_v27 = vrot.slane %v708_v58, 1  ;;  %v716_v4 = vrot.slane %v715_v38, 1 }
  0xab   :  { %v723_v46 = vrot.slane %v722_v32, 1  ;;  %v2738_v25 = vadd.f32 %v639_v34, %v638_v35  ;;  %v2740_v6 = vadd.f32 %v646_v15, %v645_v59  ;;  %v2742_v1 = vadd.f32 %v653_v33, %v652_v60  ;;  %v3592_v59 = vld [vmem:[#allocation17_spill] sm:$0xff] }
  0xac   :  { %v730_v11 = vrot.slane %v729_v5, 1  ;;  %v2744_v23 = vadd.f32 %v660_v48, %v659_v9  ;;  %v2746_v17 = vadd.f32 %v667_v36, %v666_v62  ;;  %v2748_v63 = vadd.f32 %v674_v47, %v673_v55  ;;  %v3593_v9 = vld [vmem:[#allocation19_spill] sm:$0xff] }
  0xad   :  { %1974 = vrcp.f32 %v2649_v20  ;;  %v2751_v14 = vadd.f32 %v681_v18, %v680_v0  ;;  %v2753_v50 = vadd.f32 %v688_v16, %v687_v29  ;;  %v2755_v40 = vadd.f32 %v695_v41, %v694_v28  ;;  %v3597_v29 = vld [vmem:[#allocation20_spill] sm:$0xff]  ;;  %v3602_v16 = vld [vmem:[#allocation15_spill] sm:$0xff] }
  0xae   :  { %3583 = vst [vmem:[#allocation13_spill] sm:$0xff] %v2746_v17  ;;  %3584 = vst [vmem:[#allocation23_spill] sm:$0xff] %v2748_v63  ;;  %v2757_v10 = vadd.f32 %v702_v21, %v701_v57  ;;  %v2759_v44 = vadd.f32 %v709_v27, %v708_v58  ;;  %v2761_v51 = vadd.f32 %v716_v4, %v715_v38  ;;  %1976 = vrcp.f32 %v2653_v12  ;;  %v3600_v38 = vld [vmem:[#allocation21_spill] sm:$0xff] }
  0xaf   :  { %v2763_v8 = vadd.f32 %v723_v46, %v722_v32  ;;  %v2766_v31 = vadd.f32 %v730_v11, %v729_v5  ;;  %v902_v20 = vcombine.high %v3588_v26, %v3588_v26  ;;  %v903_v35 = vcombine.high %v3589_v45, %v3589_v45 }
  0xb0   :  { %3585 = vst [vmem:[#allocation26_spill] sm:$0xff] %v2761_v51  ;;  %v904_v49 = vcombine.high %v3590_v53, %v3590_v53  ;;  %1978 = vrcp.f32 %v2655_v13  ;;  %v908_v60 = vrot.slane %v3592_v59, %v3591_v43  ;;  %v912_v3 = vrot.slane %v3593_v9, %v3591_v43  ;;  %v3596_v13 = vld [vmem:[#allocation18_spill] sm:$0xff] }
  0xb1   :  { %3586 = vst [vmem:[#allocation31_spill] sm:$0xff] %v2763_v8  ;;  %3587 = vst [vmem:[#allocation33_spill] sm:$0xff] %v2766_v31  ;;  %v3594_v12 = vcombine.high %v3592_v59, %v3592_v59  ;;  %1980 = vrcp.f32 %v2657_v52  ;;  %v3595_v55 = vcombine.high %v3593_v9, %v3593_v9  ;;  %v924_v39 = vrot.slane %v3596_v13, %v3591_v43 }
  0xb2   :  { %v928_v28 = vrot.slane %v3597_v29, %v3591_v43  ;;  %1982 = vrcp.f32 %v2663_v54  ;;  %v3598_v57 = vcombine.high %v3596_v13, %v3596_v13  ;;  %v3599_v52 = vcombine.high %v3597_v29, %v3597_v29 }
  0xb3   :  { %v916_v62 = vrot.slane %v3594_v12, %v3591_v43  ;;  %v920_v0 = vrot.slane %v3595_v55, %v3591_v43  ;;  %v940_v32 = vrot.slane %v3600_v38, %v3591_v43  ;;  %1984 = vrcp.f32 %v2665_v61 }
  0xb4   :  { %v932_v34 = vrot.slane %v3598_v57, %v3591_v43  ;;  %v936_v58 = vrot.slane %v3599_v52, %v3591_v43  ;;  %v944_v15 = vrot.slane %v3589_v45, %v3591_v43  ;;  %v3601_v54 = vcombine.high %v3600_v38, %v3600_v38 }
  0xb5   :  { %v952_v48 = vrot.slane %v903_v35, %v3591_v43  ;;  %1986 = vrcp.f32 %v2669_v7  ;;  %v2814_v5 = vrot.slane %v3588_v26, %v3591_v43  ;;  %v2818_v36 = vrot.slane %v3590_v53, %v3591_v43  ;;  %v3603_v7 = vld [vmem:[#allocation16_spill] sm:$0xff] }
  0xb6   :  { %v948_v33 = vrot.slane %v3601_v54, %v3591_v43  ;;  %v2821_v61 = vrot.slane %v902_v20, %v3591_v43  ;;  %v1971_v47 = vpop.eup %1970  ;;  %1988 = vrcp.f32 %v2671_v37  ;;  %v2825_v18 = vrot.slane %v904_v49, %v3591_v43 }
  0xb7   :  { %v2828_v41 = vmul.f32 %v908_v60, %v3602_v16  ;;  %v2831_v21 = vmul.f32 %v908_v60, %v3603_v7  ;;  %v1973_v27 = vpop.eup %1972  ;;  %1990 = vrcp.f32 %v2675_v56  ;;  %v2835_v4 = vmul.f32 %v912_v3, %v3602_v16 }
  0xb8   :  { %v2838_v46 = vmul.f32 %v912_v3, %v3603_v7  ;;  %v2841_v37 = vmul.f32 %v916_v62, %v3602_v16  ;;  %1992 = vrcp.f32 %v2685_v24  ;;  %v2845_v11 = vmul.f32 %v916_v62, %v3603_v7 }
  0xb9   :  { %v2848_v26 = vmul.f32 %v920_v0, %v3602_v16  ;;  %v2851_v56 = vmul.f32 %v920_v0, %v3603_v7  ;;  %1994 = vrcp.f32 %v2693_v42  ;;  %v748_v20 = vmul.f32 %v1971_v47, %v2732_v22 }
  0xba   :  { %v2856_v45 = vmul.f32 %v924_v39, %v3602_v16  ;;  %v2859_v35 = vmul.f32 %v924_v39, %v3603_v7  ;;  %v1975_v24 = vpop.eup %1974  ;;  %1996 = vrcp.f32 %v2701_v2  ;;  %v749_v53 = vmul.f32 %v1973_v27, %v2736_v30  ;;  %v3607_v30 = vld [vmem:[#allocation12_spill] sm:$0xff] }
  0xbb   :  { %v2864_v49 = vmul.f32 %v928_v28, %v3602_v16  ;;  %v2867_v43 = vmul.f32 %v928_v28, %v3603_v7  ;;  %1998 = vrcp.f32 %v2707_v19  ;;  %v2871_v42 = vmul.f32 %v932_v34, %v3602_v16  ;;  %v1977_v59 = vpop.eup %1976 }
  0xbc   :  { %v2874_v22 = vmul.f32 %v932_v34, %v3603_v7  ;;  %v1017_v2 = vmax.f32 %v2828_v41, %v2831_v21  ;;  %2000 = vrcp.f32 %v3607_v30  ;;  %v2880_v60 = vmul.f32 %v936_v58, %v3602_v16 }
  0xbd   :  { %3604 = vst [vmem:[#allocation34_spill] sm:$0xff] %v2867_v43  ;;  %3605 = vst [vmem:[#allocation11_spill] sm:$0xff] %v2871_v42  ;;  %v2883_v9 = vmul.f32 %v936_v58, %v3603_v7  ;;  %v1024_v19 = vmax.f32 %v2835_v4, %v2838_v46  ;;  %v750_v3 = vmul.f32 %v1975_v24, %v2738_v25  ;;  %v1979_v0 = vpop.eup %1978 }
  0xbe   :  { %3606 = vst [vmem:[#allocation28_spill] sm:$0xff] %v2874_v22  ;;  %3608 = vst [vmem:[#allocation27_spill] sm:$0xff] %v2880_v60  ;;  %v2889_v12 = vmul.f32 %v940_v32, %v3602_v16  ;;  %v2892_v62 = vmul.f32 %v940_v32, %v3603_v7  ;;  %v2895_v55 = vmul.f32 %v944_v15, %v3602_v16  ;;  %v1981_v28 = vpop.eup %1980  ;;  %v1018_v52 = vrot.slane %v1017_v2, 4 }
  0xbf   :  { %3609 = vst [vmem:[#allocation29_spill] sm:$0xff] %v2883_v9  ;;  %v781_v13 = vsel %vm780_vm0, %v749_v53, %v748_v20  ;;  %v2899_v39 = vmul.f32 %v944_v15, %v3603_v7  ;;  %v1031_v29 = vmax.f32 %v2841_v37, %v2845_v11  ;;  %v1038_v25 = vmax.f32 %v2848_v26, %v2851_v56  ;;  %v2911_v38 = vpop.eup %1982 }
  0xc0   :  { %3610 = vst [vmem:[#allocation30_spill] sm:$0xff] %v2889_v12  ;;  %3611 = vst [vmem:[#allocation32_spill] sm:$0xff] %v2892_v62  ;;  %v751_v57 = vmul.f32 %v1977_v59, %v2740_v6  ;;  %v2907_v34 = vmul.f32 %v948_v33, %v3602_v16  ;;  %v1045_v58 = vmax.f32 %v2856_v45, %v2859_v35  ;;  %v1025_v15 = vrot.slane %v1024_v19, 4  ;;  %v2920_v6 = vpop.eup %1984 }
  0xc1   :  { %3612 = vst [vmem:[#allocation35_spill] sm:$0xff] %v2895_v55  ;;  %3613 = vst [vmem:[#allocation22_spill] sm:$0xff] %v2899_v39  ;;  %v2914_v32 = vmul.f32 %v948_v33, %v3603_v7  ;;  %v1052_v54 = vmax.f32 %v2864_v49, %v2867_v43  ;;  %v1059_v47 = vmax.f32 %v2871_v42, %v2874_v22  ;;  %v1032_v30 = vrot.slane %v1031_v29, 4 }
  0xc2   :  { %3614 = vst [vmem:[#allocation24_spill] sm:$0xff] %v2907_v34  ;;  %3615 = vst [vmem:[#allocation25_spill] sm:$0xff] %v2911_v38  ;;  %v752_v27 = vmul.f32 %v1979_v0, %v2742_v1  ;;  %v2924_v20 = vmul.f32 %v952_v48, %v3602_v16  ;;  %v2927_v24 = vmul.f32 %v952_v48, %v3603_v7  ;;  %v1987_v53 = vpop.eup %1986  ;;  %v1039_v31 = vrot.slane %v1038_v25, 4 }
  0xc3   :  { %3616 = vst [vmem:[#allocation14_spill] sm:$0xff] %v2914_v32  ;;  %3617 = vst [vmem:[#allocation17_spill] sm:$0xff] %v2920_v6  ;;  %v1066_v33 = vmax.f32 %v2880_v60, %v2883_v9  ;;  %v783_v59 = vsel %vm782_vm1, %v750_v3, %v781_v13  ;;  %v1073_v63 = vmax.f32 %v2889_v12, %v2892_v62  ;;  %v1989_v6 = vpop.eup %1988  ;;  %v1046_v8 = vrot.slane %v1045_v58, 4 }
  0xc4   :  { %3618 = vst [vmem:[#allocation19_spill] sm:$0xff] %v2924_v20  ;;  %3619 = vst [vmem:[#allocation18_spill] sm:$0xff] %v2927_v24  ;;  %v2936_v1 = vmul.f32 %v2814_v5, %v3602_v16  ;;  %v1019_v0 = vmax.f32 %v1017_v2, %v1018_v52  ;;  %v1080_v48 = vmax.f32 %v2895_v55, %v2899_v39  ;;  %v1991_v51 = vpop.eup %1990  ;;  %v1053_v13 = vrot.slane %v1052_v54, 4 }
  0xc5   :  { %v2942_v38 = vmul.f32 %v2814_v5, %v3603_v7  ;;  %v1026_v3 = vmax.f32 %v1024_v19, %v1025_v15  ;;  %v1060_v17 = vrot.slane %v1059_v47, 4  ;;  %v1993_v9 = vpop.eup %1992  ;;  %v2945_v62 = vmul.f32 %v1981_v28, %v2744_v23 }
  0xc6   :  { %v1067_v12 = vrot.slane %v1066_v33, 4  ;;  %v1087_v2 = vmax.f32 %v2907_v34, %v2914_v32  ;;  %v1094_v52 = vmax.f32 %v2924_v20, %v2927_v24  ;;  %v1995_v39 = vpop.eup %1994  ;;  %v785_v55 = vsel %vm784_vm2, %v751_v57, %v783_v59 }
  0xc7   :  { %3620 = vst [vmem:[#allocation20_spill] sm:$0xff] %v2945_v62  ;;  %v1033_v60 = vmax.f32 %v1031_v29, %v1032_v30  ;;  %v1040_v5 = vmax.f32 %v1038_v25, %v1039_v31  ;;  %v1074_v22 = vrot.slane %v1073_v63, 4  ;;  %v2952_v19 = vpop.eup %1996  ;;  %v2956_v15 = vmul.f32 %v2818_v36, %v3602_v16 }
  0xc8   :  { %3621 = vst [vmem:[#allocation21_spill] sm:$0xff] %v2952_v19  ;;  %v1020_v23 = vrot.slane %v1019_v0, 2  ;;  %v1047_v28 = vmax.f32 %v1045_v58, %v1046_v8  ;;  %v1081_v62 = vrot.slane %v1080_v48, 4  ;;  %v2958_v42 = vpop.eup %1998  ;;  %v2962_v24 = vmul.f32 %v2818_v36, %v3603_v7 }
  0xc9   :  { %3622 = vst [vmem:[#allocation15_spill] sm:$0xff] %v2958_v42  ;;  %v1027_v20 = vrot.slane %v1026_v3, 2  ;;  %v1054_v57 = vmax.f32 %v1052_v54, %v1053_v13  ;;  %v1061_v29 = vmax.f32 %v1059_v47, %v1060_v17  ;;  %v2964_v31 = vpop.eup %2000  ;;  %v2967_v25 = vsel %vm786_vm3, %v752_v27, %v785_v55 }
  0xca   :  { %3623 = vst [vmem:[#allocation16_spill] sm:$0xff] %v2964_v31  ;;  %3624 = vst [vmem:[#allocation12_spill] sm:$0xff] %v2967_v25  ;;  %v1068_v59 = vmax.f32 %v1066_v33, %v1067_v12  ;;  %v1088_v30 = vrot.slane %v1087_v2, 4  ;;  %v1095_v19 = vrot.slane %v1094_v52, 4  ;;  %v2971_v8 = vmul.f32 %v2821_v61, %v3602_v16 }
  0xcb   :  { %v1034_v58 = vrot.slane %v1033_v60, 2  ;;  %v1041_v42 = vrot.slane %v1040_v5, 2  ;;  %v1075_v32 = vmax.f32 %v1073_v63, %v1074_v22  ;;  %v2975_v36 = vmul.f32 %v2821_v61, %v3603_v7 }
  0xcc   :  { %v1021_v17 = vmax.f32 %v1019_v0, %v1020_v23  ;;  %v1048_v54 = vrot.slane %v1047_v28, 2  ;;  %v1082_v47 = vmax.f32 %v1080_v48, %v1081_v62  ;;  %v2979_v55 = vmul.f32 %v2825_v18, %v3602_v16 }
  0xcd   :  { %v1028_v12 = vmax.f32 %v1026_v3, %v1027_v20  ;;  %v1055_v27 = vrot.slane %v1054_v57, 2  ;;  %v1062_v33 = vrot.slane %v1061_v29, 2  ;;  %v756_v13 = vmul.f32 %v1987_v53, %v2751_v14 }
  0xce   :  { %v1069_v31 = vrot.slane %v1068_v59, 2  ;;  %v1089_v25 = vmax.f32 %v1087_v2, %v1088_v30  ;;  %v1096_v34 = vmax.f32 %v1094_v52, %v1095_v19  ;;  %v757_v63 = vmul.f32 %v1989_v6, %v2753_v50 }
  0xcf   :  { %v1035_v22 = vmax.f32 %v1033_v60, %v1034_v58  ;;  %v1042_v61 = vmax.f32 %v1040_v5, %v1041_v42  ;;  %v1076_v43 = vrot.slane %v1075_v32, 2  ;;  %v2985_v62 = vmul.f32 %v2825_v18, %v3603_v7 }
  0xd0   :  { %v1022_v0 = vrot.slane %v1021_v17, 1  ;;  %v1049_v16 = vmax.f32 %v1047_v28, %v1048_v54  ;;  %v1083_v48 = vrot.slane %v1082_v47, 2  ;;  %v758_v20 = vmul.f32 %v1991_v51, %v2755_v40 }
  0xd1   :  { %v1029_v3 = vrot.slane %v1028_v12, 1  ;;  %v1056_v23 = vmax.f32 %v1054_v57, %v1055_v27  ;;  %v1063_v14 = vmax.f32 %v1061_v29, %v1062_v33  ;;  %v2989_v53 = vmul.f32 %v1993_v9, %v2757_v10 }
  0xd2   :  { %v1070_v2 = vmax.f32 %v1068_v59, %v1069_v31  ;;  %v1090_v50 = vrot.slane %v1089_v25, 2  ;;  %v1097_v60 = vrot.slane %v1096_v34, 2  ;;  %v794_v42 = vsel %vm780_vm0, %v757_v63, %v756_v13 }
  0xd3   :  { %v1036_v6 = vrot.slane %v1035_v22, 1  ;;  %v1043_v52 = vrot.slane %v1042_v61, 1  ;;  %v1077_v18 = vmax.f32 %v1075_v32, %v1076_v43  ;;  %v1023_v7 = vmax.f32 %v1021_v17, %v1022_v0 }
  0xd4   :  { %v1050_v5 = vrot.slane %v1049_v16, 1  ;;  %v1084_v19 = vmax.f32 %v1082_v47, %v1083_v48  ;;  %v1101_v40 = vmax.f32 %v2936_v1, %v2942_v38  ;;  %v2995_v51 = vmul.f32 %v1995_v39, %v2759_v44 }
  0xd5   :  { %v1030_v28 = vmax.f32 %v1028_v12, %v1029_v3  ;;  %v1057_v10 = vrot.slane %v1056_v23, 1  ;;  %v1064_v9 = vrot.slane %v1063_v14, 1  ;;  %v2998_v57 = vsel %vm782_vm1, %v758_v20, %v794_v42 }
  0xd6   :  { %v1071_v29 = vrot.slane %v1070_v2, 1  ;;  %v1091_v31 = vmax.f32 %v1089_v25, %v1090_v50  ;;  %v1098_v59 = vmax.f32 %v1096_v34, %v1097_v60  ;;  %v1037_v30 = vmax.f32 %v1035_v22, %v1036_v6 }
  0xd7   :  { %v1044_v43 = vmax.f32 %v1042_v61, %v1043_v52  ;;  %v1078_v32 = vrot.slane %v1077_v18, 1  ;;  %v1108_v58 = vmax.f32 %v2956_v15, %v2962_v24  ;;  %v1051_v17 = vmax.f32 %v1049_v16, %v1050_v5 }
  0xd8   :  { %v1085_v54 = vrot.slane %v1084_v19, 1  ;;  %v1102_v47 = vrot.slane %v1101_v40, 4  ;;  %v1129_v44 = vsub.f32 %v2828_v41, %v1023_v7  ;;  %v1058_v39 = vmax.f32 %v1056_v23, %v1057_v10 }
  0xd9   :  { %v3003_v12 = vmax.f32 %v1063_v14, %v1064_v9  ;;  %v1130_v27 = vsub.f32 %v2831_v21, %v1023_v7  ;;  %v1131_v33 = vsub.f32 %v2835_v4, %v1030_v28  ;;  %v3007_v25 = vmax.f32 %v1070_v2, %v1071_v29 }
  0xda   :  { %v1092_v34 = vrot.slane %v1091_v31, 1  ;;  %v1099_v13 = vrot.slane %v1098_v59, 1  ;;  %v1132_v63 = vsub.f32 %v2838_v46, %v1030_v28  ;;  %v3010_v22 = vmax.f32 %v1077_v18, %v1078_v32 }
  0xdb   :  { %v1109_v61 = vrot.slane %v1108_v58, 4  ;;  %v1115_v0 = vmax.f32 %v2971_v8, %v2975_v36  ;;  %v1133_v41 = vsub.f32 %v2841_v37, %v1037_v30  ;;  %v3015_v16 = vmax.f32 %v1084_v19, %v1085_v54  ;;  %v3629_v54 = vld [vmem:[#allocation29_spill] sm:$0xff] }
  0xdc   :  { %v1103_v48 = vmax.f32 %v1101_v40, %v1102_v47  ;;  %v1134_v21 = vsub.f32 %v2845_v11, %v1037_v30  ;;  %v1161_v4 = vmul.f32 1.442695, %v1129_v44  ;;  %v1122_v20 = vmax.f32 %v2979_v55, %v2985_v62  ;;  %v3625_v40 = vld [vmem:[#allocation34_spill] sm:$0xff] }
  0xdd   :  { %v1135_v3 = vsub.f32 %v2848_v26, %v1044_v43  ;;  %v1163_v46 = vmul.f32 1.442695, %v1130_v27  ;;  %v1165_v23 = vmul.f32 1.442695, %v1131_v33  ;;  %v3021_v14 = vmax.f32 %v1091_v31, %v1092_v34  ;;  %v3630_v27 = vld [vmem:[#allocation30_spill] sm:$0xff] }
  0xde   :  { %v3023_v2 = vmax.f32 %v1098_v59, %v1099_v13  ;;  %v1136_v50 = vsub.f32 %v2851_v56, %v1044_v43  ;;  %v1167_v37 = vmul.f32 1.442695, %v1132_v63  ;;  %v1116_v60 = vrot.slane %v1115_v0, 4  ;;  %v3628_v43 = vld [vmem:[#allocation27_spill] sm:$0xff]  ;;  %v3631_v13 = vld [vmem:[#allocation32_spill] sm:$0xff] }
  0xdf   :  { %v1137_v42 = vsub.f32 %v2856_v45, %v1051_v17  ;;  %2002 = vpow2.f32 %v1161_v4  ;;  %v1169_v11 = vmul.f32 1.442695, %v1133_v41  ;;  %v1110_v6 = vmax.f32 %v1108_v58, %v1109_v61  ;;  %v3626_v45 = vld [vmem:[#allocation11_spill] sm:$0xff]  ;;  %v3633_v4 = vld [vmem:[#allocation22_spill] sm:$0xff] }
  0xe0   :  { %v1138_v52 = vsub.f32 %v2859_v35, %v1051_v17  ;;  %2004 = vpow2.f32 %v1163_v46  ;;  %v1171_v18 = vmul.f32 1.442695, %v1134_v21  ;;  %v1104_v26 = vrot.slane %v1103_v48, 2  ;;  %v3627_v35 = vld [vmem:[#allocation28_spill] sm:$0xff]  ;;  %v3632_v41 = vld [vmem:[#allocation35_spill] sm:$0xff] }
  0xe1   :  { %v1139_v7 = vsub.f32 %v2864_v49, %v1058_v39  ;;  %2006 = vpow2.f32 %v1165_v23  ;;  %v1173_v5 = vmul.f32 1.442695, %v1135_v3  ;;  %v1123_v19 = vrot.slane %v1122_v20, 4  ;;  %v3634_v23 = vld [vmem:[#allocation24_spill] sm:$0xff] }
  0xe2   :  { %v1140_v28 = vsub.f32 %v3625_v40, %v1058_v39  ;;  %2008 = vpow2.f32 %v1167_v37  ;;  %v1175_v56 = vmul.f32 1.442695, %v1136_v50  ;;  %v1117_v10 = vmax.f32 %v1115_v0, %v1116_v60  ;;  %v3635_v60 = vld [vmem:[#allocation14_spill] sm:$0xff] }
  0xe3   :  { %v1141_v9 = vsub.f32 %v3626_v45, %v3003_v12  ;;  %2010 = vpow2.f32 %v1169_v11  ;;  %v1177_v29 = vmul.f32 1.442695, %v1137_v42  ;;  %v1111_v31 = vrot.slane %v1110_v6, 2 }
  0xe4   :  { %v1142_v59 = vsub.f32 %v3627_v35, %v3003_v12  ;;  %2012 = vpow2.f32 %v1171_v18  ;;  %v1179_v30 = vmul.f32 1.442695, %v1138_v52  ;;  %v1105_v49 = vmax.f32 %v1103_v48, %v1104_v26 }
  0xe5   :  { %v1143_v32 = vsub.f32 %v3628_v43, %v3007_v25  ;;  %2014 = vpow2.f32 %v1173_v5  ;;  %v1181_v58 = vmul.f32 1.442695, %v1139_v7  ;;  %v1124_v17 = vmax.f32 %v1122_v20, %v1123_v19  ;;  %v3636_v5 = vld [vmem:[#allocation19_spill] sm:$0xff]  ;;  %v3641_v43 = vld [vmem:[#allocation21_spill] sm:$0xff] }
  0xe6   :  { %v1144_v47 = vsub.f32 %v3629_v54, %v3007_v25  ;;  %2016 = vpow2.f32 %v1175_v56  ;;  %v1183_v44 = vmul.f32 1.442695, %v1140_v28  ;;  %v1118_v39 = vrot.slane %v1117_v10, 2 }
  0xe7   :  { %v1145_v33 = vsub.f32 %v3630_v27, %v3010_v22  ;;  %2018 = vpow2.f32 %v1177_v29  ;;  %v1185_v12 = vmul.f32 1.442695, %v1141_v9  ;;  %v1112_v34 = vmax.f32 %v1110_v6, %v1111_v31  ;;  %v3638_v9 = vld [vmem:[#allocation13_spill] sm:$0xff] }
  0xe8   :  { %v1146_v63 = vsub.f32 %v3631_v13, %v3010_v22  ;;  %2020 = vpow2.f32 %v1179_v30  ;;  %v1187_v61 = vmul.f32 1.442695, %v1142_v59  ;;  %v1106_v0 = vrot.slane %v1105_v49, 1  ;;  %v3639_v29 = vld [vmem:[#allocation25_spill] sm:$0xff] }
  0xe9   :  { %v1147_v48 = vsub.f32 %v3632_v41, %v3015_v16  ;;  %2022 = vpow2.f32 %v1181_v58  ;;  %v1189_v25 = vmul.f32 1.442695, %v1143_v32  ;;  %v1125_v21 = vrot.slane %v1124_v17, 2  ;;  %v3642_v58 = vld [vmem:[#allocation12_spill] sm:$0xff] }
  0xea   :  { %v1148_v20 = vsub.f32 %v3633_v4, %v3015_v16  ;;  %2024 = vpow2.f32 %v1183_v44  ;;  %v1191_v3 = vmul.f32 1.442695, %v1144_v47  ;;  %v1119_v46 = vmax.f32 %v1117_v10, %v1118_v39  ;;  %v1575_v16 = vld [vmem:[%s3433_s2] sm:$0xff]  ;;  %v3637_v10 = vld [vmem:[#allocation18_spill] sm:$0xff] }
  0xeb   :  { %v1149_v50 = vsub.f32 %v3634_v23, %v3021_v14  ;;  %2026 = vpow2.f32 %v1185_v12  ;;  %v1193_v22 = vmul.f32 1.442695, %v1145_v33  ;;  %v1150_v42 = vsub.f32 %v3635_v60, %v3021_v14  ;;  %1876 = vmatprep.mubr.msk.f32.mxu0 %vm1603_vm6, %v1575_v16  ;;  %v3649_v60 = vld [vmem:[#allocation16_spill] sm:$0xff] }
  0xec   :  { %v3048_v37 = vpop.eup %2002  ;;  %2028 = vpow2.f32 %v1187_v61  ;;  %v1195_v11 = vmul.f32 1.442695, %v1146_v63  ;;  %v796_v52 = vsel %vm784_vm2, %v2989_v53, %v2998_v57  ;;  %v1113_v18 = vrot.slane %v1112_v34, 1 }
  0xed   :  { %v3055_v6 = vpop.eup %2004  ;;  %2030 = vpow2.f32 %v1189_v25  ;;  %v1197_v26 = vmul.f32 1.442695, %v1147_v48  ;;  %v1107_v14 = vmax.f32 %v1105_v49, %v1106_v0  ;;  %v1151_v19 = vsub.f32 %v3636_v5, %v3023_v2  ;;  %v3640_v49 = vld [vmem:[#allocation26_spill] sm:$0xff]  ;;  %v3645_v0 = vld [vmem:[#allocation15_spill] sm:$0xff] }
  0xee   :  { %v3061_v7 = vpop.eup %2006  ;;  %2032 = vpow2.f32 %v1191_v3  ;;  %v1199_v40 = vmul.f32 1.442695, %v1148_v20  ;;  %v1126_v56 = vmax.f32 %v1124_v17, %v1125_v21  ;;  %v1152_v45 = vsub.f32 %v3637_v10, %v3023_v2  ;;  %v3643_v17 = vld [vmem:[#allocation20_spill] sm:$0xff] }
  0xef   :  { %v3065_v28 = vpop.eup %2008  ;;  %2034 = vpow2.f32 %v1193_v22  ;;  %v1201_v53 = vmul.f32 1.442695, %v1149_v50  ;;  %v754_v31 = vmul.f32 %v3639_v29, %v3638_v9  ;;  %v1120_v35 = vrot.slane %v1119_v46, 1  ;;  %v3648_v22 = vld [vmem:[#allocation33_spill] sm:$0xff] }
  0xf0   :  { %v3069_v57 = vpop.eup %2010  ;;  %2036 = vpow2.f32 %v1195_v11  ;;  %v1203_v59 = vmul.f32 1.442695, %v1150_v42  ;;  %v761_v32 = vmul.f32 %v3641_v43, %v3640_v49  ;;  %v789_v54 = vsel %vm788_vm4, %v3643_v17, %v3642_v58 }
  0xf1   :  { %v3073_v30 = vpop.eup %2012  ;;  %v1114_v2 = vmax.f32 %v1112_v34, %v1113_v18  ;;  %2038 = vpow2.f32 %v1197_v26  ;;  %v797_v44 = vsel %vm786_vm3, %v2995_v51, %v796_v52  ;;  %v1153_v39 = vsub.f32 %v2936_v1, %v1107_v14  ;;  %v3644_v34 = vld [vmem:[#allocation31_spill] sm:$0xff]  ;;  %v3647_v1 = vld [vmem:[#allocation17_spill] sm:$0xff] }
  0xf2   :  { %v3080_v47 = vpop.eup %2014  ;;  %2040 = vpow2.f32 %v1199_v40  ;;  %v1205_v27 = vmul.f32 1.442695, %v1151_v19  ;;  %v1127_v12 = vrot.slane %v1126_v56, 1  ;;  %v1154_v13 = vsub.f32 %v2942_v38, %v1107_v14  ;;  %v3646_v51 = vld [vmem:[#allocation23_spill] sm:$0xff] }
  0xf3   :  { %v3085_v33 = vpop.eup %2016  ;;  %2042 = vpow2.f32 %v1201_v53  ;;  %v1207_v63 = vmul.f32 1.442695, %v1152_v45  ;;  %v762_v41 = vmul.f32 %v3645_v0, %v3644_v34  ;;  %v1121_v48 = vmax.f32 %v1119_v46, %v1120_v35 }
  0xf4   :  { %v3088_v61 = vpop.eup %2018  ;;  %2044 = vpow2.f32 %v1203_v59  ;;  %v755_v21 = vmul.f32 %v3647_v1, %v3646_v51  ;;  %v798_v4 = vsel %vm788_vm4, %v761_v32, %v797_v44  ;;  %v1155_v20 = vsub.f32 %v2956_v15, %v1114_v2  ;;  %v2115_v32 = vld [vmem:[%s3431_s0 + $0x8] sm:$0xff] }
  0xf5   :  { %v3092_v25 = vpop.eup %2020  ;;  %v791_v3 = vsel %vm790_vm5, %v754_v31, %v789_v54  ;;  %v1156_v23 = vsub.f32 %v2962_v24, %v1114_v2  ;;  %2046 = vpow2.f32 %v1205_v27  ;;  %v1209_v50 = vmul.f32 1.442695, %v1153_v39 }
  0xf6   :  { %v3098_v38 = vpop.eup %2022  ;;  %v763_v42 = vmul.f32 %v3649_v60, %v3648_v22  ;;  %v1128_v11 = vmax.f32 %v1126_v56, %v1127_v12  ;;  %2048 = vpow2.f32 %v1207_v63  ;;  %v1211_v16 = vmul.f32 1.442695, %v1154_v13  ;;  %v3153_v63 = vld [vmem:[#allocation2] sm:$0xff] }
  0xf7   :  { %v3102_v46 = vpop.eup %2024  ;;  %v799_v15 = vsel %vm790_vm5, %v762_v41, %v798_v4  ;;  %v1157_v18 = vsub.f32 %v2971_v8, %v1121_v48  ;;  %v1158_v24 = vsub.f32 %v2975_v36, %v1121_v48  ;;  %v1213_v14 = vmul.f32 1.442695, %v1155_v20  ;;  %v3167_v20 = vld [vmem:[#allocation2 + $0x8] sm:$0xff] }
  0xf8   :  { %v3106_v52 = vpop.eup %2026  ;;  %v1225_v5 = vadd.f32 %v3055_v6, %v3048_v37  ;;  %v793_v40 = vsel %vm792_vm7, %v755_v21, %v791_v3  ;;  %2050 = vpow2.f32 %v1209_v50  ;;  %v1215_v56 = vmul.f32 1.442695, %v1156_v23 }
  0xf9   :  { %v3110_v26 = vpop.eup %2028  ;;  %v800_v45 = vsel %vm792_vm7, %v763_v42, %v799_v15  ;;  %v1159_v8 = vsub.f32 %v2979_v55, %v1128_v11  ;;  %v1160_v53 = vsub.f32 %v2985_v62, %v1128_v11  ;;  %2052 = vpow2.f32 %v1211_v16  ;;  %v2114_v55 = vld [vmem:[%s3431_s0] sm:$0xff] }
  0xfa   :  { %v3115_v19 = vpop.eup %2030  ;;  %v1217_v9 = vmul.f32 1.442695, %v1157_v18  ;;  %v1232_v29 = vadd.f32 %v3065_v28, %v3061_v7  ;;  %2054 = vpow2.f32 %v1213_v14  ;;  %v1219_v35 = vmul.f32 1.442695, %v1158_v24 }
  0xfb   :  { %v3118_v10 = vpop.eup %2032  ;;  %v1226_v59 = vrot.slane %v1225_v5, 4  ;;  %v1239_v49 = vadd.f32 %v3073_v30, %v3069_v57  ;;  %v3136_v62 = vadd.f32 %v2114_v55, %v793_v40  ;;  %v3141_v58 = vadd.f32 %v2115_v32, %v800_v45 }
  0xfc   :  { %v3123_v36 = vpop.eup %2034  ;;  %2056 = vpow2.f32 %v1215_v56  ;;  %v1221_v54 = vmul.f32 1.442695, %v1159_v8  ;;  %v1223_v2 = vmul.f32 1.442695, %v1160_v53  ;;  %v1246_v44 = vadd.f32 %v3085_v33, %v3080_v47 }
  0xfd   :  { %v3127_v31 = vpop.eup %2036  ;;  %3650 = vst [vmem:[#allocation34_spill] sm:$0xff] %v3136_v62  ;;  %3651 = vst [vmem:[#allocation11_spill] sm:$0xff] %v3141_v58  ;;  %v1253_v39 = vadd.f32 %v3092_v25, %v3088_v61  ;;  %2058 = vpow2.f32 %v1217_v9  ;;  %v1233_v12 = vrot.slane %v1232_v29, 4  ;;  %v1260_v13 = vadd.f32 %v3102_v46, %v3098_v38 }
  0xfe   :  { %v3131_v43 = vpop.eup %2038  ;;  %v1337_v34 = vmul.f32 %v3153_v63, %v3048_v37  ;;  %2060 = vpow2.f32 %v1219_v35  ;;  %v1227_v41 = vadd.f32 %v1226_v59, %v1225_v5  ;;  %v1240_v48 = vrot.slane %v1239_v49, 4 }
  0xff   :  { %v3143_v17 = vpop.eup %2040  ;;  %v1267_v51 = vadd.f32 %v3110_v26, %v3106_v52  ;;  %v1274_v1 = vadd.f32 %v3118_v10, %v3115_v19  ;;  %v1281_v21 = vadd.f32 %v3127_v31, %v3123_v36  ;;  %v1338_v37 = vmul.f32 %v3167_v20, %v3055_v6 }
 0x100   :  { %v3149_v27 = vpop.eup %2042  ;;  %v1288_v4 = vadd.f32 %v3143_v17, %v3131_v43  ;;  %2062 = vpow2.f32 %v1221_v54  ;;  %v1247_v23 = vrot.slane %v1246_v44, 4  ;;  %v1254_v50 = vrot.slane %v1253_v39, 4 }
 0x101   :  { %v3157_v0 = vpop.eup %2044  ;;  %v3175_v22 = vmul.f32 %v3153_v63, %v3061_v7  ;;  %2064 = vpow2.f32 %v1223_v2  ;;  %v1234_v42 = vadd.f32 %v1233_v12, %v1232_v29  ;;  %v1261_v11 = vrot.slane %v1260_v13, 4 }
 0x102   :  { %v3171_v3 = vpop.eup %2046  ;;  %v1295_v16 = vadd.f32 %v3157_v0, %v3149_v27  ;;  %v1228_v15 = vrot.slane %v1227_v41, 2  ;;  %v1241_v18 = vadd.f32 %v1240_v48, %v1239_v49  ;;  %v1268_v6 = vrot.slane %v1267_v51, 4 }
 0x103   :  { %3652 = vst [vmem:[#allocation28_spill] sm:$0xff] %v3171_v3  ;;  %v3177_v60 = vpop.eup %2048  ;;  %v3183_v24 = vmul.f32 %v3167_v20, %v3065_v28  ;;  %v1275_v14 = vrot.slane %v1274_v1, 4  ;;  %v1282_v5 = vrot.slane %v1281_v21, 4  ;;  %v1289_v40 = vrot.slane %v1288_v4, 4 }
 0x104   :  { %3653 = vst [vmem:[#allocation27_spill] sm:$0xff] %v3177_v60  ;;  %v3185_v7 = vadd.f32 %v1338_v37, %v1337_v34  ;;  %v1248_v45 = vadd.f32 %v1247_v23, %v1246_v44  ;;  %v1255_v8 = vadd.f32 %v1254_v50, %v1253_v39  ;;  %v1302_v53 = vadd.f32 %v3177_v60, %v3171_v3 }
 0x105   :  { %v3187_v56 = vpop.eup %2050  ;;  %v3193_v9 = vmul.f32 %v3153_v63, %v3069_v57  ;;  %v1235_v28 = vrot.slane %v1234_v42, 2  ;;  %v1262_v35 = vadd.f32 %v1261_v11, %v1260_v13  ;;  %v1296_v59 = vrot.slane %v1295_v16, 4 }
 0x106   :  { %3654 = vst [vmem:[#allocation29_spill] sm:$0xff] %v3187_v56  ;;  %v3195_v29 = vpop.eup %2052  ;;  %v3199_v49 = vmul.f32 %v3167_v20, %v3073_v30  ;;  %v1229_v55 = vadd.f32 %v1228_v15, %v1227_v41  ;;  %v1242_v32 = vrot.slane %v1241_v18, 2  ;;  %v1269_v54 = vadd.f32 %v1268_v6, %v1267_v51 }
 0x107   :  { %3655 = vst [vmem:[#allocation30_spill] sm:$0xff] %v3195_v29  ;;  %v3203_v2 = vmul.f32 %v3153_v63, %v3080_v47  ;;  %v3205_v44 = vpop.eup %2054  ;;  %v1276_v57 = vadd.f32 %v1275_v14, %v1274_v1  ;;  %v1283_v39 = vadd.f32 %v1282_v5, %v1281_v21  ;;  %v1290_v12 = vadd.f32 %v1289_v40, %v1288_v4 }
 0x108   :  { %3656 = vst [vmem:[#allocation32_spill] sm:$0xff] %v3205_v44  ;;  %v1249_v48 = vrot.slane %v1248_v45, 2  ;;  %v1256_v37 = vrot.slane %v1255_v8, 2  ;;  %v1303_v30 = vrot.slane %v1302_v53, 4  ;;  %v1309_v41 = vadd.f32 %v3195_v29, %v3187_v56 }
 0x109   :  { %v3208_v13 = vpop.eup %2056  ;;  %v1236_v51 = vadd.f32 %v1235_v28, %v1234_v42  ;;  %v1263_v23 = vrot.slane %v1262_v35, 2  ;;  %v1297_v50 = vadd.f32 %v1296_v59, %v1295_v16  ;;  %v3214_v47 = vmul.f32 %v3167_v20, %v3085_v33 }
 0x10a   :  { %3657 = vst [vmem:[#allocation35_spill] sm:$0xff] %v3208_v13  ;;  %v3216_v1 = vpop.eup %2058  ;;  %v1230_v21 = vrot.slane %v1229_v55, 1  ;;  %v1243_v4 = vadd.f32 %v1242_v32, %v1241_v18  ;;  %v1270_v11 = vrot.slane %v1269_v54, 2  ;;  %v3220_v15 = vmul.f32 %v3153_v63, %v3088_v61 }
 0x10b   :  { %v3222_v6 = vpop.eup %2060  ;;  %v1277_v14 = vrot.slane %v1276_v57, 2  ;;  %v1284_v5 = vrot.slane %v1283_v39, 2  ;;  %v1291_v42 = vrot.slane %v1290_v12, 2  ;;  %v1316_v16 = vadd.f32 %v3208_v13, %v3205_v44 }
 0x10c   :  { %v1250_v40 = vadd.f32 %v1249_v48, %v1248_v45  ;;  %v1257_v33 = vadd.f32 %v1256_v37, %v1255_v8  ;;  %v1304_v28 = vadd.f32 %v1303_v30, %v1302_v53  ;;  %v1310_v59 = vrot.slane %v1309_v41, 4 }
 0x10d   :  { %v3226_v34 = vpop.eup %2062  ;;  %v1237_v18 = vrot.slane %v1236_v51, 1  ;;  %v1264_v32 = vadd.f32 %v1263_v23, %v1262_v35  ;;  %v1298_v58 = vrot.slane %v1297_v50, 2  ;;  %v1346_v61 = vmul.f32 %v3167_v20, %v3092_v25 }
 0x10e   :  { %v3230_v62 = vpop.eup %2064  ;;  %v3232_v29 = vadd.f32 %v1230_v21, %v1229_v55  ;;  %v1244_v56 = vrot.slane %v1243_v4, 1  ;;  %v1271_v60 = vadd.f32 %v1270_v11, %v1269_v54  ;;  %v1323_v45 = vadd.f32 %v3222_v6, %v3216_v1 }
 0x10f   :  { %v1278_v8 = vadd.f32 %v1277_v14, %v1276_v57  ;;  %v1285_v53 = vadd.f32 %v1284_v5, %v1283_v39  ;;  %v1292_v48 = vadd.f32 %v1291_v42, %v1290_v12  ;;  %v1317_v37 = vrot.slane %v1316_v16, 4 }
 0x110   :  { %v1251_v30 = vrot.slane %v1250_v40, 1  ;;  %v1258_v13 = vrot.slane %v1257_v33, 1  ;;  %v1305_v35 = vrot.slane %v1304_v28, 2  ;;  %v1311_v23 = vadd.f32 %v1310_v59, %v1309_v41 }
 0x111   :  { %v3236_v44 = vadd.f32 %v1237_v18, %v1236_v51  ;;  %v1265_v25 = vrot.slane %v1264_v32, 1  ;;  %v1299_v3 = vadd.f32 %v1298_v58, %v1297_v50  ;;  %v1330_v55 = vadd.f32 %v3230_v62, %v3226_v34 }
 0x112   :  { %v3240_v21 = vadd.f32 %v1244_v56, %v1243_v4  ;;  %v1272_v54 = vrot.slane %v1271_v60, 1  ;;  %v1324_v11 = vrot.slane %v1323_v45, 4  ;;  %v1347_v57 = vmul.f32 %v3153_v63, %v3098_v38 }
 0x113   :  { %v1279_v39 = vrot.slane %v1278_v8, 1  ;;  %v1286_v12 = vrot.slane %v1285_v53, 1  ;;  %v1293_v14 = vrot.slane %v1292_v48, 1  ;;  %v1318_v5 = vadd.f32 %v1317_v37, %v1316_v16 }
 0x114   :  { %3658 = vst [vmem:[#allocation22_spill] sm:$0xff] %v3240_v21  ;;  %v3244_v42 = vadd.f32 %v1251_v30, %v1250_v40  ;;  %v3246_v41 = vadd.f32 %v1258_v13, %v1257_v33  ;;  %v1306_v51 = vadd.f32 %v1305_v35, %v1304_v28  ;;  %v1312_v58 = vrot.slane %v1311_v23, 2 }
 0x115   :  { %v3248_v50 = vadd.f32 %v1265_v25, %v1264_v32  ;;  %v1300_v59 = vrot.slane %v1299_v3, 1  ;;  %v1331_v56 = vrot.slane %v1330_v55, 4  ;;  %v1348_v4 = vmul.f32 %v3167_v20, %v3102_v46 }
 0x116   :  { %v3252_v18 = vadd.f32 %v1272_v54, %v1271_v60  ;;  %v1325_v38 = vadd.f32 %v1324_v11, %v1323_v45  ;;  %v1349_v21 = vmul.f32 %v3153_v63, %v3106_v52  ;;  %v1350_v16 = vmul.f32 %v3167_v20, %v3110_v26 }
 0x117   :  { %v3258_v13 = vadd.f32 %v1279_v39, %v1278_v8  ;;  %v3260_v40 = vadd.f32 %v1286_v12, %v1285_v53  ;;  %v3262_v33 = vadd.f32 %v1293_v14, %v1292_v48  ;;  %v1319_v28 = vrot.slane %v1318_v5, 2  ;;  %v3660_v12 = vld [vmem:[#allocation28_spill] sm:$0xff] }
 0x118   :  { %v1307_v32 = vrot.slane %v1306_v51, 1  ;;  %v1313_v37 = vadd.f32 %v1312_v58, %v1311_v23  ;;  %v1351_v46 = vmul.f32 %v3153_v63, %v3115_v19  ;;  %v1376_v60 = vadd.f32 %v3183_v24, %v3175_v22  ;;  %v3661_v58 = vld [vmem:[#allocation27_spill] sm:$0xff] }
 0x119   :  { %v3268_v45 = vadd.f32 %v1300_v59, %v1299_v3  ;;  %v1332_v52 = vadd.f32 %v1331_v56, %v1330_v55  ;;  %v3659_v26 = vrot.slane %v3185_v7, 4  ;;  %v1383_v53 = vadd.f32 %v3199_v49, %v3193_v9 }
 0x11a   :  { %v1326_v48 = vrot.slane %v1325_v38, 2  ;;  %v1352_v30 = vmul.f32 %v3167_v20, %v3118_v10  ;;  %v1390_v19 = vadd.f32 %v3214_v47, %v3203_v2  ;;  %v1397_v35 = vadd.f32 %v1346_v61, %v3220_v15 }
 0x11b   :  { %v1371_v8 = vadd.f32 %v3659_v26, %v3185_v7  ;;  %v1320_v22 = vadd.f32 %v1319_v28, %v1318_v5  ;;  %v1353_v3 = vmul.f32 %v3153_v63, %v3123_v36  ;;  %v1354_v24 = vmul.f32 %v3167_v20, %v3127_v31 }
 0x11c   :  { %v1404_v7 = vadd.f32 %v1348_v4, %v1347_v57  ;;  %v3284_v23 = vadd.f32 %v1307_v32, %v1306_v51  ;;  %v1314_v9 = vrot.slane %v1313_v37, 1  ;;  %v1355_v49 = vmul.f32 %v3153_v63, %v3131_v43 }
 0x11d   :  { %v1377_v10 = vrot.slane %v1376_v60, 4  ;;  %v1333_v25 = vrot.slane %v1332_v52, 2  ;;  %v1356_v2 = vmul.f32 %v3167_v20, %v3143_v17  ;;  %v1372_v47 = vrot.slane %v1371_v8, 2 }
 0x11e   :  { %v1384_v15 = vrot.slane %v1383_v53, 4  ;;  %v1327_v61 = vadd.f32 %v1326_v48, %v1325_v38  ;;  %v1391_v55 = vrot.slane %v1390_v19, 4  ;;  %v1398_v36 = vrot.slane %v1397_v35, 4  ;;  %v3665_v48 = vld [vmem:[#allocation35_spill] sm:$0xff] }
 0x11f   :  { %v1411_v54 = vadd.f32 %v1350_v16, %v1349_v21  ;;  %v1321_v11 = vrot.slane %v1320_v22, 1  ;;  %v1357_v31 = vmul.f32 %v3153_v63, %v3149_v27  ;;  %v1358_v57 = vmul.f32 %v3167_v20, %v3157_v0  ;;  %v3662_v0 = vld [vmem:[#allocation29_spill] sm:$0xff] }
 0x120   :  { %v1405_v39 = vrot.slane %v1404_v7, 4  ;;  %v3294_v43 = vadd.f32 %v1314_v9, %v1313_v37  ;;  %v1359_v14 = vmul.f32 %v3153_v63, %v3660_v12  ;;  %v1378_v17 = vadd.f32 %v1377_v10, %v1376_v60  ;;  %v3663_v37 = vld [vmem:[#allocation30_spill] sm:$0xff] }
 0x121   :  { %v1418_v5 = vadd.f32 %v1352_v30, %v1351_v46  ;;  %v1334_v51 = vadd.f32 %v1333_v25, %v1332_v52  ;;  %v1360_v59 = vmul.f32 %v3167_v20, %v3661_v58  ;;  %v1373_v21 = vadd.f32 %v1372_v47, %v1371_v8  ;;  %v3664_v46 = vld [vmem:[#allocation32_spill] sm:$0xff] }
 0x122   :  { %v1385_v56 = vadd.f32 %v1384_v15, %v1383_v53  ;;  %v1328_v4 = vrot.slane %v1327_v61, 1  ;;  %v1392_v38 = vadd.f32 %v1391_v55, %v1390_v19  ;;  %v1399_v27 = vadd.f32 %v1398_v36, %v1397_v35 }
 0x123   :  { %v1412_v16 = vrot.slane %v1411_v54, 4  ;;  %v3300_v28 = vadd.f32 %v1321_v11, %v1320_v22  ;;  %v1361_v32 = vmul.f32 %v3153_v63, %v3662_v0  ;;  %v1362_v26 = vmul.f32 %v3167_v20, %v3663_v37 }
 0x124   :  { %v1406_v60 = vadd.f32 %v1405_v39, %v1404_v7  ;;  %v1363_v52 = vmul.f32 %v3153_v63, %v3664_v46  ;;  %v1364_v8 = vmul.f32 %v3167_v20, %v3665_v48  ;;  %v1379_v53 = vrot.slane %v1378_v17, 2 }
 0x125   :  { %v1419_v30 = vrot.slane %v1418_v5, 4  ;;  %v1335_v19 = vrot.slane %v1334_v51, 1  ;;  %v1365_v35 = vmul.f32 %v3153_v63, %v3216_v1  ;;  %v1374_v22 = vrot.slane %v1373_v21, 1 }
 0x126   :  { %v1386_v9 = vrot.slane %v1385_v56, 2  ;;  %v3312_v10 = vadd.f32 %v1328_v4, %v1327_v61  ;;  %v1393_v25 = vrot.slane %v1392_v38, 2  ;;  %v1400_v47 = vrot.slane %v1399_v27, 2 }
 0x127   :  { %v1413_v15 = vadd.f32 %v1412_v16, %v1411_v54  ;;  %v1366_v7 = vmul.f32 %v3167_v20, %v3222_v6  ;;  %v1367_v55 = vmul.f32 %v3153_v63, %v3226_v34  ;;  %v1407_v36 = vrot.slane %v1406_v60, 2 }
 0x128   :  { %v1425_v11 = vadd.f32 %v1354_v24, %v1353_v3  ;;  %v1368_v39 = vmul.f32 %v3167_v20, %v3230_v62  ;;  %v1380_v12 = vadd.f32 %v1379_v53, %v1378_v17  ;;  %v1420_v1 = vadd.f32 %v1419_v30, %v1418_v5 }
 0x129   :  { %v1432_v58 = vadd.f32 %v1356_v2, %v1355_v49  ;;  %v3320_v0 = vadd.f32 %v1335_v19, %v1334_v51  ;;  %v3322_v61 = vadd.f32 %v1374_v22, %v1373_v21  ;;  %v1387_v4 = vadd.f32 %v1386_v9, %v1385_v56  ;;  %v1579_v22 = vld [vmem:[%s3434_s3] sm:$0xff] }
 0x12a   :  { %v1439_v54 = vadd.f32 %v1358_v57, %v1357_v31  ;;  %v1394_v16 = vadd.f32 %v1393_v25, %v1392_v38  ;;  %v3324_v37 = vadd.f32 %v1400_v47, %v1399_v27  ;;  %v1414_v6 = vrot.slane %v1413_v15, 2 }
 0x12b   :  { %v1446_v46 = vadd.f32 %v1360_v59, %v1359_v14  ;;  %v3326_v34 = vadd.f32 %v1407_v36, %v1406_v60  ;;  %v1426_v3 = vrot.slane %v1425_v11, 4  ;;  %v1453_v24 = vadd.f32 %v1362_v26, %v1361_v32  ;;  %v1582_v59 = vld [vmem:[%s3434_s3 + $0x18] sm:$0xff]  ;;  %v3666_v32 = vld [vmem:[#allocation22_spill] sm:$0xff] }
 0x12c   :  { %2066 = vrcp.f32 %v3232_v29  ;;  %v1381_v62 = vrot.slane %v1380_v12, 1  ;;  %v1421_v17 = vrot.slane %v1420_v1, 2  ;;  %v1433_v49 = vrot.slane %v1432_v58, 4  ;;  %v1580_v29 = vld [vmem:[%s3434_s3 + $0x8] sm:$0xff] }
 0x12d   :  { %v1460_v2 = vadd.f32 %v1364_v8, %v1363_v52  ;;  %v1388_v5 = vrot.slane %v1387_v4, 1  ;;  %v1440_v51 = vrot.slane %v1439_v54, 4  ;;  %v1467_v21 = vadd.f32 %v1366_v7, %v1365_v35 }
 0x12e   :  { %2068 = vrcp.f32 %v3236_v44  ;;  %v1395_v31 = vrot.slane %v1394_v16, 1  ;;  %v3330_v57 = vadd.f32 %v1414_v6, %v1413_v15  ;;  %v1447_v56 = vrot.slane %v1446_v46, 4 }
 0x12f   :  { %v1474_v14 = vadd.f32 %v1368_v39, %v1367_v55  ;;  %v1427_v38 = vadd.f32 %v1426_v3, %v1425_v11  ;;  %v1454_v27 = vrot.slane %v1453_v24, 4  ;;  %2070 = vrcp.f32 %v3666_v32 }
 0x130   :  { %v1402_v26 = vrot.slane %v3324_v37, 1  ;;  %v1434_v44 = vadd.f32 %v1433_v49, %v1432_v58  ;;  %v1461_v60 = vrot.slane %v1460_v2, 4  ;;  %2072 = vrcp.f32 %v3244_v42  ;;  %v1581_v42 = vld [vmem:[%s3434_s3 + $0x10] sm:$0xff] }
 0x131   :  { %v2189_v52 = vmov 0   ;;  %v1409_v48 = vrot.slane %v3326_v34, 1  ;;  %v1441_v8 = vadd.f32 %v1440_v51, %v1439_v54  ;;  %v1468_v53 = vrot.slane %v1467_v21, 4 }
 0x132   :  { %1900 = vset.pattern.permute.xlu0 %v2189_v52  ;;  %1901 = vset.pattern.permute.xlu1 %v2189_v52  ;;  %2074 = vrcp.f32 %v3246_v41  ;;  %v1422_v30 = vadd.f32 %v1421_v17, %v1420_v1  ;;  %v1448_v19 = vadd.f32 %v1447_v56, %v1446_v46  ;;  %v1475_v35 = vrot.slane %v1474_v14, 4 }
 0x133   :  { %1600 = vperm.xlu0 %1900, %v1582_v59   ;;  %1590 = vperm.xlu1 %1901, %v1580_v29   ;;  %2076 = vrcp.f32 %v3248_v50  ;;  %v1382_v9 = vadd.f32 %v1381_v62, %v1380_v12  ;;  %v1428_v25 = vrot.slane %v1427_v38, 2  ;;  %v1455_v47 = vadd.f32 %v1454_v27, %v1453_v24 }
 0x134   :  { %2078 = vrcp.f32 %v3252_v18  ;;  %v1389_v41 = vadd.f32 %v1388_v5, %v1387_v4  ;;  %v1435_v15 = vrot.slane %v1434_v44, 2  ;;  %v1462_v7 = vadd.f32 %v1461_v60, %v1460_v2  ;;  %v1731_v18 = vld [vmem:[%s3436_s5] sm:$0xff] }
 0x135   :  { %2080 = vrcp.f32 %v3258_v13  ;;  %v1416_v50 = vrot.slane %v3330_v57, 1  ;;  %v1442_v55 = vrot.slane %v1441_v8, 2  ;;  %v1469_v36 = vadd.f32 %v1468_v53, %v1467_v21  ;;  %v1732_v13 = vld [vmem:[%s3436_s5 + $0x8] sm:$0xff] }
 0x136   :  { %2082 = vrcp.f32 %v3260_v40  ;;  %v1396_v11 = vadd.f32 %v1395_v31, %v1394_v16  ;;  %v1449_v39 = vrot.slane %v1448_v19, 2  ;;  %v1476_v12 = vadd.f32 %v1475_v35, %v1474_v14 }
 0x137   :  { %1595 = vperm.xlu0 %1900, %v1581_v42   ;;  %1585 = vperm.xlu1 %1901, %v1579_v22   ;;  %2084 = vrcp.f32 %v3262_v33  ;;  %v1403_v1 = vadd.f32 %v1402_v26, %v3324_v37  ;;  %v1429_v58 = vadd.f32 %v1428_v25, %v1427_v38  ;;  %v1456_v4 = vrot.slane %v1455_v47, 2 }
 0x138   :  { %2086 = vrcp.f32 %v3268_v45  ;;  %v1410_v54 = vadd.f32 %v1409_v48, %v3326_v34  ;;  %v1436_v16 = vadd.f32 %v1435_v15, %v1434_v44  ;;  %v1463_v6 = vrot.slane %v1462_v7, 2 }
 0x139   :  { %v2067_v40 = vpop.eup %2066  ;;  %2088 = vrcp.f32 %v3284_v23  ;;  %v1443_v33 = vadd.f32 %v1442_v55, %v1441_v8  ;;  %v1470_v46 = vrot.slane %v1469_v36, 2  ;;  %v1423_v24 = vrot.slane %v1422_v30, 1 }
 0x13a   :  { %2090 = vrcp.f32 %v3294_v43  ;;  %v1497_v3 = vmul.f32 %v2067_v40, %v3322_v61  ;;  %v1450_v62 = vadd.f32 %v1449_v39, %v1448_v19  ;;  %v1477_v17 = vrot.slane %v1476_v12, 2  ;;  %v3668_v40 = vld [vmem:[#allocation11_spill] sm:$0xff] }
 0x13b   :  { %1735 = vperm.xlu0 %1900, %v1731_v18   ;;  %1740 = vperm.xlu1 %1901, %v1732_v13   ;;  %v2069_v37 = vpop.eup %2068  ;;  %2092 = vrcp.f32 %v3300_v28  ;;  %v1430_v45 = vrot.slane %v1429_v58, 1  ;;  %v1457_v34 = vadd.f32 %v1456_v4, %v1455_v47  ;;  %v1417_v2 = vadd.f32 %v1416_v50, %v3330_v57 }
 0x13c   :  { %2094 = vrcp.f32 %v3312_v10  ;;  %v1498_v49 = vmul.f32 %v2069_v37, %v1382_v9  ;;  %v2071_v23 = vpop.eup %2070  ;;  %v1437_v5 = vrot.slane %v1436_v16, 1  ;;  %v1464_v43 = vadd.f32 %v1463_v6, %v1462_v7 }
 0x13d   :  { %2096 = vrcp.f32 %v3320_v0  ;;  %v2073_v61 = vpop.eup %2072  ;;  %v1444_v51 = vrot.slane %v1443_v33, 1  ;;  %v1471_v21 = vadd.f32 %v1470_v46, %v1469_v36  ;;  %v1499_v31 = vmul.f32 %v2071_v23, %v1389_v41 }
 0x13e   :  { %v1529_v56 = vsel %vm780_vm0, %v1498_v49, %v1497_v3  ;;  %v1424_v28 = vadd.f32 %v1423_v24, %v1422_v30  ;;  %v1451_v59 = vrot.slane %v1450_v62, 1  ;;  %v1478_v29 = vadd.f32 %v1477_v17, %v1476_v12  ;;  %v3667_v12 = vld [vmem:[#allocation34_spill] sm:$0xff] }
 0x13f   :  { %v2075_v14 = vpop.eup %2074  ;;  %v1500_v38 = vmul.f32 %v2073_v61, %v1396_v11  ;;  %v1431_v27 = vadd.f32 %v1430_v45, %v1429_v58  ;;  %v1458_v32 = vrot.slane %v1457_v34, 1  ;;  %v1530_v57 = vsel %vm782_vm1, %v1499_v31, %v1529_v56 }
 0x140   :  { %v2077_v10 = vpop.eup %2076  ;;  %v1501_v26 = vmul.f32 %v2075_v14, %v1403_v1  ;;  %v1438_v60 = vadd.f32 %v1437_v5, %v1436_v16  ;;  %v1465_v0 = vrot.slane %v1464_v43, 1  ;;  %v1445_v53 = vadd.f32 %v1444_v51, %v1443_v33 }
 0x141   :  { %v2079_v44 = vpop.eup %2078  ;;  %v1502_v52 = vmul.f32 %v2077_v10, %v1410_v54  ;;  %v1531_v48 = vsel %vm784_vm2, %v1500_v38, %v1530_v57  ;;  %v1472_v19 = vrot.slane %v1471_v21, 1  ;;  %v1452_v22 = vadd.f32 %v1451_v59, %v1450_v62 }
 0x142   :  { %v2081_v8 = vpop.eup %2080  ;;  %v1503_v35 = vmul.f32 %v2079_v44, %v1417_v2  ;;  %v1532_v30 = vsel %vm786_vm3, %v1501_v26, %v1531_v48  ;;  %v1479_v9 = vrot.slane %v1478_v29, 1  ;;  %v1459_v15 = vadd.f32 %v1458_v32, %v1457_v34 }
 0x143   :  { %v2083_v42 = vpop.eup %2082  ;;  %v1504_v25 = vmul.f32 %v2081_v8, %v1424_v28  ;;  %v1533_v47 = vsel %vm788_vm4, %v1502_v52, %v1532_v30  ;;  %v1466_v36 = vadd.f32 %v1465_v0, %v1464_v43  ;;  %v1556_v18 = vmul.f32 %v3667_v12, %v3667_v12 }
 0x144   :  { %v2085_v41 = vpop.eup %2084  ;;  %v1505_v7 = vmul.f32 %v2083_v42, %v1431_v27  ;;  %v1534_v50 = vsel %vm790_vm5, %v1503_v35, %v1533_v47  ;;  %v1473_v1 = vadd.f32 %v1472_v19, %v1471_v21  ;;  %v1557_v54 = vmul.f32 %v3668_v40, %v3668_v40  ;;  %v1729_v47 = vld [vmem:[#allocation5] sm:$0xff] }
 0x145   :  { %v2087_v55 = vpop.eup %2086  ;;  %v1506_v11 = vmul.f32 %v2085_v41, %v1438_v60  ;;  %v1535_v39 = vsel %vm792_vm7, %v1504_v25, %v1534_v50  ;;  %v1480_v6 = vadd.f32 %v1479_v9, %v1478_v29  ;;  %v1547_v62 = vadd.f32 %v3668_v40, %v3667_v12  ;;  %v1577_v9 = vld [vmem:[%s3433_s2 + $0x10] sm:$0xff]  ;;  %v1578_v25 = vld [vmem:[%s3433_s2 + $0x18] sm:$0xff]  ;;  %1890 = vmatprep.mubr.msk.f32.mxu1 %vm1603_vm6, %v1729_v47 }
 0x146   :  { %v2089_v13 = vpop.eup %2088  ;;  %v1507_v58 = vmul.f32 %v2087_v55, %v1445_v53  ;;  %v3381_v4 = vadd.f32 %v3153_v63, %v1535_v39  ;;  %v1560_v5 = vadd.f32 %v1557_v54, %v1556_v18 }
 0x147   :  { %v2091_v16 = vpop.eup %2090  ;;  %v1508_v33 = vmul.f32 %v2089_v13, %v1452_v22  ;;  %v1536_v46 = vsel %vm780_vm0, %v1506_v11, %v1505_v7  ;;  %v1576_v22 = vld [vmem:[%s3433_s2 + $0x8] sm:$0xff]  ;;  %s2190_s2 = smov [#allocation7]  }
 0x148   :  { %v2093_v3 = vpop.eup %2092  ;;  %v1509_v37 = vmul.f32 %v2091_v16, %v1459_v15  ;;  %v1537_v24 = vsel %vm782_vm1, %v1507_v58, %v1536_v46  ;;  %v1558_v2 = vmul.f32 %v3381_v4, %v3381_v4  ;;  %v1548_v21 = vadd.f32 %v1547_v62, %v3381_v4  ;;  %s1831_s9 = sshll.u32 %s2190_s2, 4  ;;  %s1832_s9 = int_to_ptr.vmem [resolvable:$true] %s1831_s9 }
 0x149   :  { %v2095_v17 = vpop.eup %2094  ;;  %v1510_v45 = vmul.f32 %v2093_v3, %v1466_v36  ;;  %v1538_v63 = vsel %vm784_vm2, %v1508_v33, %v1537_v24  ;;  %s2158_s4 = scalar_lea.vmem %s1832_s9, 256  ;;  %p2163_p11 = scmp.lt.s32.totalorder %s1832_s9, %s1832_s9 }
 0x14a   :  { %v2097_v34 = vpop.eup %2096  ;;  %v1511_v49 = vmul.f32 %v2095_v17, %v1473_v1  ;;  %v1539_v23 = vsel %vm786_vm3, %v1509_v37, %v1538_v63  ;;  %v1561_v14 = vadd.f32 %v1560_v5, %v1558_v2  ;;  %p2159_p10 = scmp.ne.s32.totalorder %s1832_s9, %s2158_s4  ;;  %p2164_p12 = scmp.lt.s32.totalorder %s2158_s4, %s2158_s4 }
 0x14b   :  { %v1512_v43 = vmul.f32 %v2097_v34, %v1480_v6  ;;  %v1540_v61 = vsel %vm788_vm4, %v1510_v45, %v1539_v23 }
 0x14c   :  { %v1541_v51 = vsel %vm790_vm5, %v1511_v49, %v1540_v61  ;;  %p2165_p13 = por %p2164_p12, %p2163_p11 }
 0x14d   :  { %v1542_v31 = vsel %vm792_vm7, %v1512_v43, %v1541_v51 }
 0x14e   :  { %v3398_v56 = vadd.f32 %v3167_v20, %v1542_v31  ;;  %p2166_p0 = pnand %p2165_p13, %p2159_p10 }
 0x150   :  { %v1549_v28 = vadd.f32 %v1548_v21, %v3398_v56  ;;  %v1559_v59 = vmul.f32 %v3398_v56, %v3398_v56  ;;  %v1730_v21 = vld [vmem:[#allocation5 + $0x8] sm:$0xff] }
 0x152   :  { %v1550_v29 = vrot.slane %v1549_v28, 4  ;;  %v1562_v38 = vadd.f32 %v1561_v14, %v1559_v59 }
 0x154   :  { %v1551_v10 = vadd.f32 %v1550_v29, %v1549_v28  ;;  %v1563_v27 = vrot.slane %v1562_v38, 4 }
 0x156   :  { %v1552_v32 = vrot.slane %v1551_v10, 2  ;;  %v1564_v26 = vadd.f32 %v1563_v27, %v1562_v38 }
 0x158   :  { %v1553_v57 = vadd.f32 %v1552_v32, %v1551_v10  ;;  %v1565_v44 = vrot.slane %v1564_v26, 2 }
 0x15a   :  { %v1554_v60 = vrot.slane %v1553_v57, 1  ;;  %v1566_v0 = vadd.f32 %v1565_v44, %v1564_v26 }
 0x15c   :  { %v1555_v52 = vadd.f32 %v1554_v60, %v1553_v57  ;;  %v1567_v48 = vrot.slane %v1566_v0, 1 }
 0x15e   :  { %v1568_v20 = vadd.f32 %v1567_v48, %v1566_v0  ;;  %v1569_v8 = vmul.f32 0.03125, %v1555_v52 }
 0x160   :  { %v1570_v53 = vmul.f32 %v1569_v8, %v1568_v20 }
 0x162   :  { %v1574_v19 = vmul.f32 %v1570_v53, %v3398_v56  ;;  %v1573_v35 = vmul.f32 %v1570_v53, %v3381_v4  ;;  %v1572_v30 = vmul.f32 %v1570_v53, %v3668_v40  ;;  %v1571_v42 = vmul.f32 %v1570_v53, %v3667_v12 }
 0x164   :  { %1868 = vmatprep.subr.mxu0 %v1574_v19 }
 0x165   :  { %1869 = vmatpush3.msra.mxu0 %v1574_v19 }
 0x166   :  { %1870 = vmatprep.subr.mxu0 %v1573_v35 }
 0x167   :  { %1871 = vmatpush3.msra.mxu0 %v1573_v35 }
 0x168   :  { %1872 = vmatprep.subr.mxu0 %v1572_v30 }
 0x169   :  { %1873 = vmatpush3.msra.mxu0 %v1572_v30 }
 0x16a   :  { %1874 = vmatprep.subr.mxu0 %v1571_v42 }
 0x16b   :  { %1875 = vmatpush3.msra.mxu0 %v1571_v42 }
 0x16c   :  { %1877 = vmatmul.mubr.msk.f32.vlgmr.msra.gmra.mxu0 %vm1603_vm6, %v1576_v22 }
 0x16d   :  { %1879 = vmatprep.mubr.msk.f32.mxu0 %vm1603_vm6, %v1577_v9 }
 0x170   :  { %1880 = vmatmul.mubr.msk.f32.gmra.mxu0 %vm1603_vm6, %v1578_v25 }
 0x1ae   :  { %v1591_v41 = vpop.permute.xlu1 %1590  ;;  %v1601_v15 = vpop.permute.xlu0 %1600 }
 0x1b2   :  { %v1586_v50 = vpop.permute.xlu1 %1585  ;;  %v1596_v58 = vpop.permute.xlu0 %1595 }
 0x1b6   :  { %v1741_v31 = vpop.permute.xlu1 %1740  ;;  %v1736_v14 = vpop.permute.xlu0 %1735 }
 0x22c   :  { %v1878_v7 = vpop.f32.mrf.mxu0 }
 0x22d   :  { %v1688_v55 = vadd.f32 %v1878_v7, %v1591_v41 }
 0x22e   :  { %v1682_v36 = vpop.f32.mrf.mxu0 }
 0x22f   :  { %v1849_v11 = vmul.f32 -1.442695, %v1688_v55  ;;  %v1683_v39 = vadd.f32 %v1682_v36, %v1586_v50 }
 0x230   :  { %v1881_v18 = vpop.f32.mrf.mxu0 }
 0x231   :  { %v1848_v13 = vmul.f32 -1.442695, %v1683_v39  ;;  %v1698_v1 = vadd.f32 %v1881_v18, %v1601_v15  ;;  %2098 = vpow2.f32 %v1849_v11 }
 0x232   :  { %v1692_v54 = vpop.f32.mrf.mxu0 }
 0x233   :  { %v1851_v16 = vmul.f32 -1.442695, %v1698_v1  ;;  %v1693_v6 = vadd.f32 %v1692_v54, %v1596_v58  ;;  %2100 = vpow2.f32 %v1848_v13 }
 0x235   :  { %2102 = vpow2.f32 %v1851_v16  ;;  %v1850_v33 = vmul.f32 -1.442695, %v1693_v6 }
 0x237   :  { %2104 = vpow2.f32 %v1850_v33 }
 0x23e   :  { %v2099_v46 = vpop.eup %2098 }
 0x23f   :  { %v1714_v24 = vadd.f32 1.0, %v2099_v46 }
 0x240   :  { %v2101_v3 = vpop.eup %2100 }
 0x241   :  { %v1713_v45 = vadd.f32 1.0, %v2101_v3 }
 0x242   :  { %v2103_v37 = vpop.eup %2102 }
 0x243   :  { %v1716_v62 = vadd.f32 1.0, %v2103_v37 }
 0x244   :  { %v2105_v17 = vpop.eup %2104 }
 0x245   :  { %2106 = vrcp.f32 %v1716_v62  ;;  %v1715_v63 = vadd.f32 1.0, %v2105_v17 }
 0x246   :  { %2108 = vrcp.f32 %v1714_v24 }
 0x247   :  { %2110 = vrcp.f32 %v1715_v63 }
 0x248   :  { %2112 = vrcp.f32 %v1713_v45 }
 0x252   :  { %v2107_v34 = vpop.eup %2106 }
 0x253   :  { %v2109_v49 = vpop.eup %2108  ;;  %v1728_v23 = vmul.f32 %v2107_v34, %v3398_v56 }
 0x254   :  { %v2111_v2 = vpop.eup %2110  ;;  %v1726_v61 = vmul.f32 %v2109_v49, %v3668_v40 }
 0x255   :  { %1882 = vmatprep.subr.mxu1 %v1728_v23  ;;  %v1727_v5 = vmul.f32 %v2111_v2, %v3381_v4  ;;  %v2113_v43 = vpop.eup %2112 }
 0x256   :  { %1883 = vmatpush3.msra.mxu1 %v1728_v23  ;;  %v1725_v51 = vmul.f32 %v2113_v43, %v3667_v12 }
 0x257   :  { %1884 = vmatprep.subr.mxu1 %v1727_v5 }
 0x258   :  { %1885 = vmatpush3.msra.mxu1 %v1727_v5 }
 0x259   :  { %1886 = vmatprep.subr.mxu1 %v1726_v61 }
 0x25a   :  { %1887 = vmatpush3.msra.mxu1 %v1726_v61 }
 0x25b   :  { %1888 = vmatprep.subr.mxu1 %v1725_v51 }
 0x25c   :  { %1889 = vmatpush3.msra.mxu1 %v1725_v51 }
 0x25d   :  { %1891 = vmatmul.mubr.msk.f32.vlgmr.msra.gmra.mxu1 %vm1603_vm6, %v1730_v21 }
 0x31d   :  { %v1892_v56 = vpop.f32.mrf.mxu1 }
 0x31e   :  { %v1821_v4 = vadd.f32 %v1892_v56, %v1741_v31 }
 0x31f   :  { %v1815_v28 = vpop.f32.mrf.mxu1 }
 0x320   :  { %1825 = vst [vmem:[#allocation7 + $0x8] sm:$0xff] %v1821_v4  ;;  %v1816_v59 = vadd.f32 %v1815_v28, %v1736_v14 }
 0x322   :  { %1824 = vst [vmem:[#allocation7] sm:$0xff] %v1816_v59 }
 0x323   :  { %2169 = shalt.err (!%p2166_p0)
}
 0x324   :  { %1837 = dma.vmem_to_hbm [thread:$0]  %s1832_s9, 256, %s3437_s6, [#allocation4], %s2185_s24, %s2185_s24, %s2186_s25  }
 0x325   :  { %2182 = dma.done.wait [#allocation4], 256  }
 0x326   :  { %2183 = vsyncadd [#allocation4], 4294967040 }
 0x327   :  { %1841 = vsyncpa [#allocation3], 1 }
 0x328   :  { %1842 = vsyncpa [#allocation6], 1 }
 0x329   :  { %1843 = vsyncpa [#allocation4], 1 }

</bundles_post_ra>
